<compile_context>
chip_gen: v7x
topology: tpu7x:2x2x1
jax: 0.10.0
libtpu: 0.0.40
codegen_flags: <defaults>
</compile_context>

<pallas_src>
import math
from functools import partial

import jax
import jax.numpy as jnp
import numpy as np
from jax.experimental import pallas as pl
from jax.experimental.pallas import tpu as pltpu


BATCH_TILE = 8          # one f32 sublane group per batch tile


# ------------------------------ fused kernel --------------------------------

def fused_rnn_kernel(x_ref, wfb_ref, bfb_ref, whh_ref, bhn_ref,
                     wcls_ref, bcls_ref, out_ref, gi_scr):
    """Per batch tile:
       x_ref:   (T*Bt, 2I)  bf16, time-major [x1 | x2] concat
       wfb_ref: (2I, 24H)   bf16 input weights; cols [0:12H] forward-time dirs
                            (rnn1 fwd, rnn2 fwd), cols [12H:24H] backward-time
                            dirs — gate-major [R 4H | Z 4H | N 4H], dir-minor
       bfb_ref: (1, 24H)    f32 bias_ih of both halves; b_hh(r), b_hh(z) of all
                            four directions are pre-folded into the first half
       whh_ref: (4H, 12H)   bf16 block-diagonal recurrent weights
       bhn_ref: (1, 4H)     f32 b_hh(n) of all four dirs (stays inside r*(.))
       wcls:    (4H, CP)    bf16 classifier stacked 4x along rows (sums dirs),
                            padded to CP=128 lanes
       bcls:    (1, CP)     f32
       out_ref: (Bt, CP)    f32
       gi_scr:  (T*Bt, 24H) f32 scratch for the hoisted input projection.
       Gate order inside each 12H block is PyTorch's (r, z, n)."""
    Bt = out_ref.shape[0]
    H4, H12 = whh_ref.shape
    T = x_ref.shape[0] // Bt

    # ---- hoisted input projection: ONE bf16 matmul, f32 accumulate ---------
    gi_scr[...] = (jnp.dot(x_ref[...], wfb_ref[...],
                           preferred_element_type=jnp.float32)
                   + bfb_ref[...])

    # b_hh(n) broadcast hoisted out of the serial loop (JAX does not CSE it).
    bhn_b = jnp.broadcast_to(bhn_ref[...], (Bt, H4))
    h = jnp.zeros((Bt, H4), jnp.float32)      # 4 directions stacked along lanes

    # ---- fully unrolled recurrence (T static): only h @ whh per step -------
    # Backward dirs read their projection at time T-1-t.  All slices are
    # static & aligned: rows at multiples of Bt (=8), cols at multiples of 128.
    for t in range(T):
        gi = (gi_scr[t * Bt:(t + 1) * Bt, 0:H12]
              + gi_scr[(T - 1 - t) * Bt:(T - t) * Bt, H12:2 * H12])  # (Bt,12H)
        gh = jnp.dot(h.astype(jnp.bfloat16), whh_ref[...],
                     preferred_element_type=jnp.float32)             # (Bt,12H)
        # gate math stays f32 (v5e has no bf16 VPU/EUP)
        r = jax.nn.sigmoid(gi[:, 0:H4] + gh[:, 0:H4])
        z = jax.nn.sigmoid(gi[:, H4:2 * H4] + gh[:, H4:2 * H4])
        n = jnp.tanh(gi[:, 2 * H4:3 * H4] + r * (gh[:, 2 * H4:3 * H4] + bhn_b))
        h = (1.0 - z) * n + z * h

    # ---- fused classifier: wcls stacked 4x also sums the directions --------
    out_ref[...] = (jnp.dot(h.astype(jnp.bfloat16), wcls_ref[...],
                            preferred_element_type=jnp.float32)
                    + bcls_ref[...])


# ------------------------------ wrapper --------------------------------------

@partial(jax.jit, static_argnames=("num_classes",))
def rnn_forward(packed, x1, x2, *, num_classes):
    """Equivalent of RNN.forward(x1, x2) with bidirectional=True (batch_first)."""
    B, T, I = x1.shape
    H4, H12 = packed["whh"].shape
    CP = packed["wcls"].shape[1]
    Bt = BATCH_TILE
    Bp = max(Bt, ((B + Bt - 1) // Bt) * Bt)
    ntiles = Bp // Bt

    # Layout plumbing only (no reversed copies): time-major, concat features,
    # pad batch, group into batch tiles, cast MXU operand to bf16.
    x1t = jnp.swapaxes(x1, 0, 1)                                    # (T, B, I)
    x2t = jnp.swapaxes(x2, 0, 1)
    xcat = jnp.concatenate([x1t, x2t], axis=-1)                     # (T, B, 2I)
    if Bp != B:
        xcat = jnp.pad(xcat, ((0, 0), (0, Bp - B), (0, 0)))
    xcat = (xcat.reshape(T, ntiles, Bt, 2 * I)
                .transpose(1, 0, 2, 3)
                .reshape(ntiles, T * Bt, 2 * I)
                .astype(jnp.bfloat16))                              # (nt, T*Bt, 2I)

    def full(arr):   # whole-array block, same block every grid step (resident)
        return pl.BlockSpec(arr.shape, lambda b, _n=arr.ndim: (0,) * _n)

    out = pl.pallas_call(
        fused_rnn_kernel,
        out_shape=jax.ShapeDtypeStruct((Bp, CP), jnp.float32),
        grid=(ntiles,),
        in_specs=[
            pl.BlockSpec((None, T * Bt, 2 * I), lambda b: (b, 0, 0)),  # x, pipelined
            full(packed["wfb"]), full(packed["bfb"]), full(packed["whh"]),
            full(packed["bhn"]), full(packed["wcls"]), full(packed["bcls"]),
        ],
        out_specs=pl.BlockSpec((Bt, CP), lambda b: (b, 0)),
        scratch_shapes=[pltpu.VMEM((T * Bt, 2 * H12), jnp.float32)],
        compiler_params=pltpu.CompilerParams(
            dimension_semantics=("parallel",)),        # 2 TCs on v7x
    )(xcat, packed["wfb"], packed["bfb"], packed["whh"],
      packed["bhn"], packed["wcls"], packed["bcls"])
    return out[:B, :num_classes]


# --------------------------- parameters --------------------------------------

def init_raw_params(key, input_size, hidden_size, num_classes):
    """Per-direction GRU params (PyTorch layout, pre-transposed) + classifier."""
    k = 1.0 / math.sqrt(hidden_size)

    def gru_dir(k_):
        k0, k1, k2, k3 = jax.random.split(k_, 4)
        return {
            "wih": jax.random.uniform(k0, (input_size, 3 * hidden_size),
                                      jnp.float32, -k, k),
            "whh": jax.random.uniform(k1, (hidden_size, 3 * hidden_size),
                                      jnp.float32, -k, k),
            "bih": jax.random.uniform(k2, (3 * hidden_size,), jnp.float32, -k, k),
            "bhh": jax.random.uniform(k3, (3 * hidden_size,), jnp.float32, -k, k),
        }

    ks = jax.random.split(key, 6)
    return {
        "rnn1": {"fwd": gru_dir(ks[0]), "bwd": gru_dir(ks[1])},
        "rnn2": {"fwd": gru_dir(ks[2]), "bwd": gru_dir(ks[3])},
        "w_cls": jax.random.uniform(ks[4], (hidden_size, num_classes),
                                    jnp.float32, -k, k),
        "b_cls": jax.random.uniform(ks[5], (num_classes,), jnp.float32, -k, k),
    }


def pack_params(raw, input_size, hidden_size, num_classes, lane=128):
    """Pack the 4 directions + classifier into the fused-kernel layout."""
    I, H = input_size, hidden_size
    H4, H12 = 4 * H, 12 * H
    # dir 0: rnn1 fwd, 1: rnn1 bwd, 2: rnn2 fwd, 3: rnn2 bwd
    dirs = [raw["rnn1"]["fwd"], raw["rnn1"]["bwd"],
            raw["rnn2"]["fwd"], raw["rnn2"]["bwd"]]

    wfb = jnp.zeros((2 * I, 2 * H12), jnp.float32)
    bfb = jnp.zeros((1, 2 * H12), jnp.float32)
    whh = jnp.zeros((H4, H12), jnp.float32)
    bhn = jnp.zeros((1, H4), jnp.float32)

    for d, p in enumerate(dirs):
        row0 = (d // 2) * I               # rnn1 reads x1 rows, rnn2 reads x2 rows
        half = H12 if (d % 2 == 1) else 0  # bwd dirs live in the second 12H half
        for g in range(3):                # PyTorch gate order (r, z, n)
            col = g * H4 + d * H
            wfb = wfb.at[row0:row0 + I, half + col:half + col + H].set(
                p["wih"][:, g * H:(g + 1) * H])
            bfb = bfb.at[0, half + col:half + col + H].set(
                p["bih"][g * H:(g + 1) * H])
            whh = whh.at[d * H:(d + 1) * H, col:col + H].set(
                p["whh"][:, g * H:(g + 1) * H])
            if g < 2:     # fold b_hh(r), b_hh(z) into the first (fwd) bias half
                bfb = bfb.at[0, col:col + H].add(p["bhh"][g * H:(g + 1) * H])
            else:         # b_hh(n) must stay inside r*(.)
                bhn = bhn.at[0, d * H:(d + 1) * H].set(p["bhh"][2 * H:3 * H])

    CP = max(lane, ((num_classes + lane - 1) // lane) * lane)  # lane-dense store
    wcls = jnp.zeros((H4, CP), jnp.float32).at[:, :num_classes].set(
        jnp.concatenate([raw["w_cls"]] * 4, axis=0))
    bcls = jnp.zeros((1, CP), jnp.float32).at[0, :num_classes].set(raw["b_cls"])

    return {
        "wfb": wfb.astype(jnp.bfloat16),   # bf16 MXU operands, f32 accumulate
        "bfb": bfb,
        "whh": whh.astype(jnp.bfloat16),
        "bhn": bhn,
        "wcls": wcls.astype(jnp.bfloat16),
        "bcls": bcls,
    }


# ----------------------------- pure-JAX reference ----------------------------

def _gru_last_hidden_ref(x, p):
    H = p["whh"].shape[0]

    def step(h, x_t):
        gi = x_t @ p["wih"] + p["bih"]
        gh = h @ p["whh"] + p["bhh"]
        r = jax.nn.sigmoid(gi[:, :H] + gh[:, :H])
        z = jax.nn.sigmoid(gi[:, H:2 * H] + gh[:, H:2 * H])
        n = jnp.tanh(gi[:, 2 * H:] + r * gh[:, 2 * H:])
        return (1.0 - z) * n + z * h, None

    h0 = jnp.zeros((x.shape[0], H), jnp.float32)
    h, _ = jax.lax.scan(step, h0, jnp.swapaxes(x, 0, 1))
    return h


def rnn_forward_ref(raw, x1, x2):
    h1f = _gru_last_hidden_ref(x1, raw["rnn1"]["fwd"])
    h1b = _gru_last_hidden_ref(x1[:, ::-1, :], raw["rnn1"]["bwd"])
    h2f = _gru_last_hidden_ref(x2, raw["rnn2"]["fwd"])
    h2b = _gru_last_hidden_ref(x2[:, ::-1, :], raw["rnn2"]["bwd"])
    hx = h1f + h2f + h1b + h2b
    return hx @ raw["w_cls"] + raw["b_cls"]


# ---------------------------------- main -------------------------------------

if __name__ == "__main__":
    # Small shapes consistent with the module's forward (batch-first sequences).
    # H=32 keeps 4H=128 / 12H=384 exactly lane aligned in the fused layout.
    B, T, I, H, C = 2, 8, 64, 32, 16

    key = jax.random.PRNGKey(0)
    k_p, k_x1, k_x2 = jax.random.split(key, 3)
    raw = init_raw_params(k_p, I, H, C)
    packed = pack_params(raw, I, H, C)

    x1 = jax.random.normal(k_x1, (B, T, I), jnp.float32)
    x2 = jax.random.normal(k_x2, (B, T, I), jnp.float32)

    out = rnn_forward(packed, x1, x2, num_classes=C)
    out = jax.block_until_ready(out)

    ref = rnn_forward_ref(raw, x1, x2)
    assert out.shape == (B, C), out.shape
    assert bool(jnp.all(jnp.isfinite(out)))
    # bf16 MXU operands vs. an all-f32 reference: allow bf16-level tolerance.
    np.testing.assert_allclose(np.asarray(out), np.asarray(ref),
                               rtol=2e-2, atol=2e-2)

    print("KERNEL_OK")
</pallas_src>

<mosaic_0001>
module attributes {stable_mosaic.version = 11 : i64} {
  func.func @fused_rnn_kernel(%arg0: i32, %arg1: memref<1x64x128xbf16, #tpu.memory_space<vmem>>, %arg2: memref<128x768xbf16, #tpu.memory_space<vmem>>, %arg3: memref<1x768xf32, #tpu.memory_space<vmem>>, %arg4: memref<128x384xbf16, #tpu.memory_space<vmem>>, %arg5: memref<1x128xf32, #tpu.memory_space<vmem>>, %arg6: memref<128x128xbf16, #tpu.memory_space<vmem>>, %arg7: memref<1x128xf32, #tpu.memory_space<vmem>>, %arg8: memref<8x128xf32, #tpu.memory_space<vmem>>, %arg9: memref<64x768xf32, #tpu.memory_space<vmem>>) attributes {dimension_semantics = [#tpu.dimension_semantics<parallel>], iteration_bounds = array<i64: 1>, scalar_prefetch = 0 : i64, scratch_operands = 1 : i64, tpu.core_type = #tpu.core_type<tc>, window_params = [{transform_indices = @transform_0, window_bounds = array<i64: 1, 64, 128>}, {pipeline_mode = #tpu.pipeline_mode<synchronous>, transform_indices = @transform_1, window_bounds = array<i64: 128, 768>}, {pipeline_mode = #tpu.pipeline_mode<synchronous>, transform_indices = @transform_2, window_bounds = array<i64: 1, 768>}, {pipeline_mode = #tpu.pipeline_mode<synchronous>, transform_indices = @transform_3, window_bounds = array<i64: 128, 384>}, {pipeline_mode = #tpu.pipeline_mode<synchronous>, transform_indices = @transform_4, window_bounds = array<i64: 1, 128>}, {pipeline_mode = #tpu.pipeline_mode<synchronous>, transform_indices = @transform_5, window_bounds = array<i64: 128, 128>}, {pipeline_mode = #tpu.pipeline_mode<synchronous>, transform_indices = @transform_6, window_bounds = array<i64: 1, 128>}, {transform_indices = @transform_7, window_bounds = array<i64: 8, 128>}]} {
    %c0 = arith.constant 0 : index
    %c0_0 = arith.constant 0 : index
    %c0_1 = arith.constant 0 : index
    %0 = vector.load %arg1[%c0, %c0_0, %c0_1] : memref<1x64x128xbf16, #tpu.memory_space<vmem>>, vector<1x64x128xbf16>
    %1 = vector.shape_cast %0 : vector<1x64x128xbf16> to vector<64x128xbf16>
    %c0_2 = arith.constant 0 : index
    %c0_3 = arith.constant 0 : index
    %2 = vector.load %arg2[%c0_2, %c0_3] : memref<128x768xbf16, #tpu.memory_space<vmem>>, vector<128x768xbf16>
    %cst = arith.constant dense<0.000000e+00> : vector<64x768xf32>
    %3 = tpu.matmul %1, %2, %cst {dimension_numbers = #tpu.dot_dimension_numbers<[1], [0], [0], [1], [0, 0, 1, 1], [], []>} : vector<64x128xbf16>, vector<128x768xbf16>, vector<64x768xf32> -> vector<64x768xf32>
    %c0_4 = arith.constant 0 : index
    %c0_5 = arith.constant 0 : index
    %4 = vector.load %arg3[%c0_4, %c0_5] : memref<1x768xf32, #tpu.memory_space<vmem>>, vector<1x768xf32>
    %5 = vector.broadcast %4 : vector<1x768xf32> to vector<64x768xf32>
    %6 = arith.addf %3, %5 : vector<64x768xf32>
    %c0_6 = arith.constant 0 : index
    %c0_7 = arith.constant 0 : index
    %7 = vector.load %arg9[%c0_6, %c0_7] : memref<64x768xf32, #tpu.memory_space<vmem>>, vector<64x768xf32>
    tpu.vector_store %arg9[%c0_6, %c0_7], %6 {strides = array<i32>} : memref<64x768xf32, #tpu.memory_space<vmem>>, vector<64x768xf32>,
    %c0_8 = arith.constant 0 : index
    %c0_9 = arith.constant 0 : index
    %8 = vector.load %arg5[%c0_8, %c0_9] : memref<1x128xf32, #tpu.memory_space<vmem>>, vector<1x128xf32>
    %9 = vector.shape_cast %8 : vector<1x128xf32> to vector<1x128xf32>
    %10 = vector.broadcast %9 : vector<1x128xf32> to vector<8x128xf32>
    %cst_10 = arith.constant 0.000000e+00 : f32
    %11 = vector.broadcast %cst_10 : f32 to vector<8x128xf32>
    %c0_11 = arith.constant 0 : index
    %c0_12 = arith.constant 0 : index
    %12 = vector.load %arg9[%c0_11, %c0_12] : memref<64x768xf32, #tpu.memory_space<vmem>>, vector<8x384xf32>
    %c56 = arith.constant 56 : index
    %c384 = arith.constant 384 : index
    %13 = vector.load %arg9[%c56, %c384] : memref<64x768xf32, #tpu.memory_space<vmem>>, vector<8x384xf32>
    %14 = arith.addf %12, %13 : vector<8x384xf32>
    %15 = arith.truncf %11 : vector<8x128xf32> to vector<8x128xbf16>
    %c0_13 = arith.constant 0 : index
    %c0_14 = arith.constant 0 : index
    %16 = vector.load %arg4[%c0_13, %c0_14] : memref<128x384xbf16, #tpu.memory_space<vmem>>, vector<128x384xbf16>
    %cst_15 = arith.constant dense<0.000000e+00> : vector<8x384xf32>
    %17 = tpu.matmul %15, %16, %cst_15 {dimension_numbers = #tpu.dot_dimension_numbers<[1], [0], [0], [1], [0, 0, 1, 1], [], []>} : vector<8x128xbf16>, vector<128x384xbf16>, vector<8x384xf32> -> vector<8x384xf32>
    %18 = vector.extract_strided_slice %14 {offsets = [0, 0], sizes = [8, 128], strides = [1, 1]} : vector<8x384xf32> to vector<8x128xf32>
    %19 = vector.extract_strided_slice %17 {offsets = [0, 0], sizes = [8, 128], strides = [1, 1]} : vector<8x384xf32> to vector<8x128xf32>
    %20 = arith.addf %18, %19 : vector<8x128xf32>
    %21 = arith.negf %20 : vector<8x128xf32>
    %22 = math.exp %21 : vector<8x128xf32>
    %cst_16 = arith.constant 1.000000e+00 : f32
    %23 = vector.broadcast %cst_16 : f32 to vector<8x128xf32>
    %24 = arith.addf %23, %22 : vector<8x128xf32>
    %25 = arith.divf %23, %24 : vector<8x128xf32>
    %26 = vector.extract_strided_slice %14 {offsets = [0, 128], sizes = [8, 128], strides = [1, 1]} : vector<8x384xf32> to vector<8x128xf32>
    %27 = vector.extract_strided_slice %17 {offsets = [0, 128], sizes = [8, 128], strides = [1, 1]} : vector<8x384xf32> to vector<8x128xf32>
    %28 = arith.addf %26, %27 : vector<8x128xf32>
    %29 = arith.negf %28 : vector<8x128xf32>
    %30 = math.exp %29 : vector<8x128xf32>
    %cst_17 = arith.constant 1.000000e+00 : f32
    %31 = vector.broadcast %cst_17 : f32 to vector<8x128xf32>
    %32 = arith.addf %31, %30 : vector<8x128xf32>
    %33 = arith.divf %31, %32 : vector<8x128xf32>
    %34 = vector.extract_strided_slice %14 {offsets = [0, 256], sizes = [8, 128], strides = [1, 1]} : vector<8x384xf32> to vector<8x128xf32>
    %35 = vector.extract_strided_slice %17 {offsets = [0, 256], sizes = [8, 128], strides = [1, 1]} : vector<8x384xf32> to vector<8x128xf32>
    %36 = arith.addf %35, %10 : vector<8x128xf32>
    %37 = arith.mulf %25, %36 : vector<8x128xf32>
    %38 = arith.addf %34, %37 : vector<8x128xf32>
    %39 = math.tanh %38 : vector<8x128xf32>
    %cst_18 = arith.constant 1.000000e+00 : f32
    %40 = vector.broadcast %cst_18 : f32 to vector<8x128xf32>
    %41 = arith.subf %40, %33 : vector<8x128xf32>
    %42 = arith.mulf %41, %39 : vector<8x128xf32>
    %43 = arith.mulf %33, %11 : vector<8x128xf32>
    %44 = arith.addf %42, %43 : vector<8x128xf32>
    %c8 = arith.constant 8 : index
    %c0_19 = arith.constant 0 : index
    %45 = vector.load %arg9[%c8, %c0_19] : memref<64x768xf32, #tpu.memory_space<vmem>>, vector<8x384xf32>
    %c48 = arith.constant 48 : index
    %c384_20 = arith.constant 384 : index
    %46 = vector.load %arg9[%c48, %c384_20] : memref<64x768xf32, #tpu.memory_space<vmem>>, vector<8x384xf32>
    %47 = arith.addf %45, %46 : vector<8x384xf32>
    %48 = arith.truncf %44 : vector<8x128xf32> to vector<8x128xbf16>
    %c0_21 = arith.constant 0 : index
    %c0_22 = arith.constant 0 : index
    %49 = vector.load %arg4[%c0_21, %c0_22] : memref<128x384xbf16, #tpu.memory_space<vmem>>, vector<128x384xbf16>
    %cst_23 = arith.constant dense<0.000000e+00> : vector<8x384xf32>
    %50 = tpu.matmul %48, %49, %cst_23 {dimension_numbers = #tpu.dot_dimension_numbers<[1], [0], [0], [1], [0, 0, 1, 1], [], []>} : vector<8x128xbf16>, vector<128x384xbf16>, vector<8x384xf32> -> vector<8x384xf32>
    %51 = vector.extract_strided_slice %47 {offsets = [0, 0], sizes = [8, 128], strides = [1, 1]} : vector<8x384xf32> to vector<8x128xf32>
    %52 = vector.extract_strided_slice %50 {offsets = [0, 0], sizes = [8, 128], strides = [1, 1]} : vector<8x384xf32> to vector<8x128xf32>
    %53 = arith.addf %51, %52 : vector<8x128xf32>
    %54 = arith.negf %53 : vector<8x128xf32>
    %55 = math.exp %54 : vector<8x128xf32>
    %cst_24 = arith.constant 1.000000e+00 : f32
    %56 = vector.broadcast %cst_24 : f32 to vector<8x128xf32>
    %57 = arith.addf %56, %55 : vector<8x128xf32>
    %58 = arith.divf %56, %57 : vector<8x128xf32>
    %59 = vector.extract_strided_slice %47 {offsets = [0, 128], sizes = [8, 128], strides = [1, 1]} : vector<8x384xf32> to vector<8x128xf32>
    %60 = vector.extract_strided_slice %50 {offsets = [0, 128], sizes = [8, 128], strides = [1, 1]} : vector<8x384xf32> to vector<8x128xf32>
    %61 = arith.addf %59, %60 : vector<8x128xf32>
    %62 = arith.negf %61 : vector<8x128xf32>
    %63 = math.exp %62 : vector<8x128xf32>
    %cst_25 = arith.constant 1.000000e+00 : f32
    %64 = vector.broadcast %cst_25 : f32 to vector<8x128xf32>
    %65 = arith.addf %64, %63 : vector<8x128xf32>
    %66 = arith.divf %64, %65 : vector<8x128xf32>
    %67 = vector.extract_strided_slice %47 {offsets = [0, 256], sizes = [8, 128], strides = [1, 1]} : vector<8x384xf32> to vector<8x128xf32>
    %68 = vector.extract_strided_slice %50 {offsets = [0, 256], sizes = [8, 128], strides = [1, 1]} : vector<8x384xf32> to vector<8x128xf32>
    %69 = arith.addf %68, %10 : vector<8x128xf32>
    %70 = arith.mulf %58, %69 : vector<8x128xf32>
    %71 = arith.addf %67, %70 : vector<8x128xf32>
    %72 = math.tanh %71 : vector<8x128xf32>
    %cst_26 = arith.constant 1.000000e+00 : f32
    %73 = vector.broadcast %cst_26 : f32 to vector<8x128xf32>
    %74 = arith.subf %73, %66 : vector<8x128xf32>
    %75 = arith.mulf %74, %72 : vector<8x128xf32>
    %76 = arith.mulf %66, %44 : vector<8x128xf32>
    %77 = arith.addf %75, %76 : vector<8x128xf32>
    %c16 = arith.constant 16 : index
    %c0_27 = arith.constant 0 : index
    %78 = vector.load %arg9[%c16, %c0_27] : memref<64x768xf32, #tpu.memory_space<vmem>>, vector<8x384xf32>
    %c40 = arith.constant 40 : index
    %c384_28 = arith.constant 384 : index
    %79 = vector.load %arg9[%c40, %c384_28] : memref<64x768xf32, #tpu.memory_space<vmem>>, vector<8x384xf32>
    %80 = arith.addf %78, %79 : vector<8x384xf32>
    %81 = arith.truncf %77 : vector<8x128xf32> to vector<8x128xbf16>
    %c0_29 = arith.constant 0 : index
    %c0_30 = arith.constant 0 : index
    %82 = vector.load %arg4[%c0_29, %c0_30] : memref<128x384xbf16, #tpu.memory_space<vmem>>, vector<128x384xbf16>
    %cst_31 = arith.constant dense<0.000000e+00> : vector<8x384xf32>
    %83 = tpu.matmul %81, %82, %cst_31 {dimension_numbers = #tpu.dot_dimension_numbers<[1], [0], [0], [1], [0, 0, 1, 1], [], []>} : vector<8x128xbf16>, vector<128x384xbf16>, vector<8x384xf32> -> vector<8x384xf32>
    %84 = vector.extract_strided_slice %80 {offsets = [0, 0], sizes = [8, 128], strides = [1, 1]} : vector<8x384xf32> to vector<8x128xf32>
    %85 = vector.extract_strided_slice %83 {offsets = [0, 0], sizes = [8, 128], strides = [1, 1]} : vector<8x384xf32> to vector<8x128xf32>
    %86 = arith.addf %84, %85 : vector<8x128xf32>
    %87 = arith.negf %86 : vector<8x128xf32>
    %88 = math.exp %87 : vector<8x128xf32>
    %cst_32 = arith.constant 1.000000e+00 : f32
    %89 = vector.broadcast %cst_32 : f32 to vector<8x128xf32>
    %90 = arith.addf %89, %88 : vector<8x128xf32>
    %91 = arith.divf %89, %90 : vector<8x128xf32>
    %92 = vector.extract_strided_slice %80 {offsets = [0, 128], sizes = [8, 128], strides = [1, 1]} : vector<8x384xf32> to vector<8x128xf32>
    %93 = vector.extract_strided_slice %83 {offsets = [0, 128], sizes = [8, 128], strides = [1, 1]} : vector<8x384xf32> to vector<8x128xf32>
    %94 = arith.addf %92, %93 : vector<8x128xf32>
    %95 = arith.negf %94 : vector<8x128xf32>
    %96 = math.exp %95 : vector<8x128xf32>
    %cst_33 = arith.constant 1.000000e+00 : f32
    %97 = vector.broadcast %cst_33 : f32 to vector<8x128xf32>
    %98 = arith.addf %97, %96 : vector<8x128xf32>
    %99 = arith.divf %97, %98 : vector<8x128xf32>
    %100 = vector.extract_strided_slice %80 {offsets = [0, 256], sizes = [8, 128], strides = [1, 1]} : vector<8x384xf32> to vector<8x128xf32>
    %101 = vector.extract_strided_slice %83 {offsets = [0, 256], sizes = [8, 128], strides = [1, 1]} : vector<8x384xf32> to vector<8x128xf32>
    %102 = arith.addf %101, %10 : vector<8x128xf32>
    %103 = arith.mulf %91, %102 : vector<8x128xf32>
    %104 = arith.addf %100, %103 : vector<8x128xf32>
    %105 = math.tanh %104 : vector<8x128xf32>
    %cst_34 = arith.constant 1.000000e+00 : f32
    %106 = vector.broadcast %cst_34 : f32 to vector<8x128xf32>
    %107 = arith.subf %106, %99 : vector<8x128xf32>
    %108 = arith.mulf %107, %105 : vector<8x128xf32>
    %109 = arith.mulf %99, %77 : vector<8x128xf32>
    %110 = arith.addf %108, %109 : vector<8x128xf32>
    %c24 = arith.constant 24 : index
    %c0_35 = arith.constant 0 : index
    %111 = vector.load %arg9[%c24, %c0_35] : memref<64x768xf32, #tpu.memory_space<vmem>>, vector<8x384xf32>
    %c32 = arith.constant 32 : index
    %c384_36 = arith.constant 384 : index
    %112 = vector.load %arg9[%c32, %c384_36] : memref<64x768xf32, #tpu.memory_space<vmem>>, vector<8x384xf32>
    %113 = arith.addf %111, %112 : vector<8x384xf32>
    %114 = arith.truncf %110 : vector<8x128xf32> to vector<8x128xbf16>
    %c0_37 = arith.constant 0 : index
    %c0_38 = arith.constant 0 : index
    %115 = vector.load %arg4[%c0_37, %c0_38] : memref<128x384xbf16, #tpu.memory_space<vmem>>, vector<128x384xbf16>
    %cst_39 = arith.constant dense<0.000000e+00> : vector<8x384xf32>
    %116 = tpu.matmul %114, %115, %cst_39 {dimension_numbers = #tpu.dot_dimension_numbers<[1], [0], [0], [1], [0, 0, 1, 1], [], []>} : vector<8x128xbf16>, vector<128x384xbf16>, vector<8x384xf32> -> vector<8x384xf32>
    %117 = vector.extract_strided_slice %113 {offsets = [0, 0], sizes = [8, 128], strides = [1, 1]} : vector<8x384xf32> to vector<8x128xf32>
    %118 = vector.extract_strided_slice %116 {offsets = [0, 0], sizes = [8, 128], strides = [1, 1]} : vector<8x384xf32> to vector<8x128xf32>
    %119 = arith.addf %117, %118 : vector<8x128xf32>
    %120 = arith.negf %119 : vector<8x128xf32>
    %121 = math.exp %120 : vector<8x128xf32>
    %cst_40 = arith.constant 1.000000e+00 : f32
    %122 = vector.broadcast %cst_40 : f32 to vector<8x128xf32>
    %123 = arith.addf %122, %121 : vector<8x128xf32>
    %124 = arith.divf %122, %123 : vector<8x128xf32>
    %125 = vector.extract_strided_slice %113 {offsets = [0, 128], sizes = [8, 128], strides = [1, 1]} : vector<8x384xf32> to vector<8x128xf32>
    %126 = vector.extract_strided_slice %116 {offsets = [0, 128], sizes = [8, 128], strides = [1, 1]} : vector<8x384xf32> to vector<8x128xf32>
    %127 = arith.addf %125, %126 : vector<8x128xf32>
    %128 = arith.negf %127 : vector<8x128xf32>
    %129 = math.exp %128 : vector<8x128xf32>
    %cst_41 = arith.constant 1.000000e+00 : f32
    %130 = vector.broadcast %cst_41 : f32 to vector<8x128xf32>
    %131 = arith.addf %130, %129 : vector<8x128xf32>
    %132 = arith.divf %130, %131 : vector<8x128xf32>
    %133 = vector.extract_strided_slice %113 {offsets = [0, 256], sizes = [8, 128], strides = [1, 1]} : vector<8x384xf32> to vector<8x128xf32>
    %134 = vector.extract_strided_slice %116 {offsets = [0, 256], sizes = [8, 128], strides = [1, 1]} : vector<8x384xf32> to vector<8x128xf32>
    %135 = arith.addf %134, %10 : vector<8x128xf32>
    %136 = arith.mulf %124, %135 : vector<8x128xf32>
    %137 = arith.addf %133, %136 : vector<8x128xf32>
    %138 = math.tanh %137 : vector<8x128xf32>
    %cst_42 = arith.constant 1.000000e+00 : f32
    %139 = vector.broadcast %cst_42 : f32 to vector<8x128xf32>
    %140 = arith.subf %139, %132 : vector<8x128xf32>
    %141 = arith.mulf %140, %138 : vector<8x128xf32>
    %142 = arith.mulf %132, %110 : vector<8x128xf32>
    %143 = arith.addf %141, %142 : vector<8x128xf32>
    %c32_43 = arith.constant 32 : index
    %c0_44 = arith.constant 0 : index
    %144 = vector.load %arg9[%c32_43, %c0_44] : memref<64x768xf32, #tpu.memory_space<vmem>>, vector<8x384xf32>
    %c24_45 = arith.constant 24 : index
    %c384_46 = arith.constant 384 : index
    %145 = vector.load %arg9[%c24_45, %c384_46] : memref<64x768xf32, #tpu.memory_space<vmem>>, vector<8x384xf32>
    %146 = arith.addf %144, %145 : vector<8x384xf32>
    %147 = arith.truncf %143 : vector<8x128xf32> to vector<8x128xbf16>
    %c0_47 = arith.constant 0 : index
    %c0_48 = arith.constant 0 : index
    %148 = vector.load %arg4[%c0_47, %c0_48] : memref<128x384xbf16, #tpu.memory_space<vmem>>, vector<128x384xbf16>
    %cst_49 = arith.constant dense<0.000000e+00> : vector<8x384xf32>
    %149 = tpu.matmul %147, %148, %cst_49 {dimension_numbers = #tpu.dot_dimension_numbers<[1], [0], [0], [1], [0, 0, 1, 1], [], []>} : vector<8x128xbf16>, vector<128x384xbf16>, vector<8x384xf32> -> vector<8x384xf32>
    %150 = vector.extract_strided_slice %146 {offsets = [0, 0], sizes = [8, 128], strides = [1, 1]} : vector<8x384xf32> to vector<8x128xf32>
    %151 = vector.extract_strided_slice %149 {offsets = [0, 0], sizes = [8, 128], strides = [1, 1]} : vector<8x384xf32> to vector<8x128xf32>
    %152 = arith.addf %150, %151 : vector<8x128xf32>
    %153 = arith.negf %152 : vector<8x128xf32>
    %154 = math.exp %153 : vector<8x128xf32>
    %cst_50 = arith.constant 1.000000e+00 : f32
    %155 = vector.broadcast %cst_50 : f32 to vector<8x128xf32>
    %156 = arith.addf %155, %154 : vector<8x128xf32>
    %157 = arith.divf %155, %156 : vector<8x128xf32>
    %158 = vector.extract_strided_slice %146 {offsets = [0, 128], sizes = [8, 128], strides = [1, 1]} : vector<8x384xf32> to vector<8x128xf32>
    %159 = vector.extract_strided_slice %149 {offsets = [0, 128], sizes = [8, 128], strides = [1, 1]} : vector<8x384xf32> to vector<8x128xf32>
    %160 = arith.addf %158, %159 : vector<8x128xf32>
    %161 = arith.negf %160 : vector<8x128xf32>
    %162 = math.exp %161 : vector<8x128xf32>
    %cst_51 = arith.constant 1.000000e+00 : f32
    %163 = vector.broadcast %cst_51 : f32 to vector<8x128xf32>
    %164 = arith.addf %163, %162 : vector<8x128xf32>
    %165 = arith.divf %163, %164 : vector<8x128xf32>
    %166 = vector.extract_strided_slice %146 {offsets = [0, 256], sizes = [8, 128], strides = [1, 1]} : vector<8x384xf32> to vector<8x128xf32>
    %167 = vector.extract_strided_slice %149 {offsets = [0, 256], sizes = [8, 128], strides = [1, 1]} : vector<8x384xf32> to vector<8x128xf32>
    %168 = arith.addf %167, %10 : vector<8x128xf32>
    %169 = arith.mulf %157, %168 : vector<8x128xf32>
    %170 = arith.addf %166, %169 : vector<8x128xf32>
    %171 = math.tanh %170 : vector<8x128xf32>
    %cst_52 = arith.constant 1.000000e+00 : f32
    %172 = vector.broadcast %cst_52 : f32 to vector<8x128xf32>
    %173 = arith.subf %172, %165 : vector<8x128xf32>
    %174 = arith.mulf %173, %171 : vector<8x128xf32>
    %175 = arith.mulf %165, %143 : vector<8x128xf32>
    %176 = arith.addf %174, %175 : vector<8x128xf32>
    %c40_53 = arith.constant 40 : index
    %c0_54 = arith.constant 0 : index
    %177 = vector.load %arg9[%c40_53, %c0_54] : memref<64x768xf32, #tpu.memory_space<vmem>>, vector<8x384xf32>
    %c16_55 = arith.constant 16 : index
    %c384_56 = arith.constant 384 : index
    %178 = vector.load %arg9[%c16_55, %c384_56] : memref<64x768xf32, #tpu.memory_space<vmem>>, vector<8x384xf32>
    %179 = arith.addf %177, %178 : vector<8x384xf32>
    %180 = arith.truncf %176 : vector<8x128xf32> to vector<8x128xbf16>
    %c0_57 = arith.constant 0 : index
    %c0_58 = arith.constant 0 : index
    %181 = vector.load %arg4[%c0_57, %c0_58] : memref<128x384xbf16, #tpu.memory_space<vmem>>, vector<128x384xbf16>
    %cst_59 = arith.constant dense<0.000000e+00> : vector<8x384xf32>
    %182 = tpu.matmul %180, %181, %cst_59 {dimension_numbers = #tpu.dot_dimension_numbers<[1], [0], [0], [1], [0, 0, 1, 1], [], []>} : vector<8x128xbf16>, vector<128x384xbf16>, vector<8x384xf32> -> vector<8x384xf32>
    %183 = vector.extract_strided_slice %179 {offsets = [0, 0], sizes = [8, 128], strides = [1, 1]} : vector<8x384xf32> to vector<8x128xf32>
    %184 = vector.extract_strided_slice %182 {offsets = [0, 0], sizes = [8, 128], strides = [1, 1]} : vector<8x384xf32> to vector<8x128xf32>
    %185 = arith.addf %183, %184 : vector<8x128xf32>
    %186 = arith.negf %185 : vector<8x128xf32>
    %187 = math.exp %186 : vector<8x128xf32>
    %cst_60 = arith.constant 1.000000e+00 : f32
    %188 = vector.broadcast %cst_60 : f32 to vector<8x128xf32>
    %189 = arith.addf %188, %187 : vector<8x128xf32>
    %190 = arith.divf %188, %189 : vector<8x128xf32>
    %191 = vector.extract_strided_slice %179 {offsets = [0, 128], sizes = [8, 128], strides = [1, 1]} : vector<8x384xf32> to vector<8x128xf32>
    %192 = vector.extract_strided_slice %182 {offsets = [0, 128], sizes = [8, 128], strides = [1, 1]} : vector<8x384xf32> to vector<8x128xf32>
    %193 = arith.addf %191, %192 : vector<8x128xf32>
    %194 = arith.negf %193 : vector<8x128xf32>
    %195 = math.exp %194 : vector<8x128xf32>
    %cst_61 = arith.constant 1.000000e+00 : f32
    %196 = vector.broadcast %cst_61 : f32 to vector<8x128xf32>
    %197 = arith.addf %196, %195 : vector<8x128xf32>
    %198 = arith.divf %196, %197 : vector<8x128xf32>
    %199 = vector.extract_strided_slice %179 {offsets = [0, 256], sizes = [8, 128], strides = [1, 1]} : vector<8x384xf32> to vector<8x128xf32>
    %200 = vector.extract_strided_slice %182 {offsets = [0, 256], sizes = [8, 128], strides = [1, 1]} : vector<8x384xf32> to vector<8x128xf32>
    %201 = arith.addf %200, %10 : vector<8x128xf32>
    %202 = arith.mulf %190, %201 : vector<8x128xf32>
    %203 = arith.addf %199, %202 : vector<8x128xf32>
    %204 = math.tanh %203 : vector<8x128xf32>
    %cst_62 = arith.constant 1.000000e+00 : f32
    %205 = vector.broadcast %cst_62 : f32 to vector<8x128xf32>
    %206 = arith.subf %205, %198 : vector<8x128xf32>
    %207 = arith.mulf %206, %204 : vector<8x128xf32>
    %208 = arith.mulf %198, %176 : vector<8x128xf32>
    %209 = arith.addf %207, %208 : vector<8x128xf32>
    %c48_63 = arith.constant 48 : index
    %c0_64 = arith.constant 0 : index
    %210 = vector.load %arg9[%c48_63, %c0_64] : memref<64x768xf32, #tpu.memory_space<vmem>>, vector<8x384xf32>
    %c8_65 = arith.constant 8 : index
    %c384_66 = arith.constant 384 : index
    %211 = vector.load %arg9[%c8_65, %c384_66] : memref<64x768xf32, #tpu.memory_space<vmem>>, vector<8x384xf32>
    %212 = arith.addf %210, %211 : vector<8x384xf32>
    %213 = arith.truncf %209 : vector<8x128xf32> to vector<8x128xbf16>
    %c0_67 = arith.constant 0 : index
    %c0_68 = arith.constant 0 : index
    %214 = vector.load %arg4[%c0_67, %c0_68] : memref<128x384xbf16, #tpu.memory_space<vmem>>, vector<128x384xbf16>
    %cst_69 = arith.constant dense<0.000000e+00> : vector<8x384xf32>
    %215 = tpu.matmul %213, %214, %cst_69 {dimension_numbers = #tpu.dot_dimension_numbers<[1], [0], [0], [1], [0, 0, 1, 1], [], []>} : vector<8x128xbf16>, vector<128x384xbf16>, vector<8x384xf32> -> vector<8x384xf32>
    %216 = vector.extract_strided_slice %212 {offsets = [0, 0], sizes = [8, 128], strides = [1, 1]} : vector<8x384xf32> to vector<8x128xf32>
    %217 = vector.extract_strided_slice %215 {offsets = [0, 0], sizes = [8, 128], strides = [1, 1]} : vector<8x384xf32> to vector<8x128xf32>
    %218 = arith.addf %216, %217 : vector<8x128xf32>
    %219 = arith.negf %218 : vector<8x128xf32>
    %220 = math.exp %219 : vector<8x128xf32>
    %cst_70 = arith.constant 1.000000e+00 : f32
    %221 = vector.broadcast %cst_70 : f32 to vector<8x128xf32>
    %222 = arith.addf %221, %220 : vector<8x128xf32>
    %223 = arith.divf %221, %222 : vector<8x128xf32>
    %224 = vector.extract_strided_slice %212 {offsets = [0, 128], sizes = [8, 128], strides = [1, 1]} : vector<8x384xf32> to vector<8x128xf32>
    %225 = vector.extract_strided_slice %215 {offsets = [0, 128], sizes = [8, 128], strides = [1, 1]} : vector<8x384xf32> to vector<8x128xf32>
    %226 = arith.addf %224, %225 : vector<8x128xf32>
    %227 = arith.negf %226 : vector<8x128xf32>
    %228 = math.exp %227 : vector<8x128xf32>
    %cst_71 = arith.constant 1.000000e+00 : f32
    %229 = vector.broadcast %cst_71 : f32 to vector<8x128xf32>
    %230 = arith.addf %229, %228 : vector<8x128xf32>
    %231 = arith.divf %229, %230 : vector<8x128xf32>
    %232 = vector.extract_strided_slice %212 {offsets = [0, 256], sizes = [8, 128], strides = [1, 1]} : vector<8x384xf32> to vector<8x128xf32>
    %233 = vector.extract_strided_slice %215 {offsets = [0, 256], sizes = [8, 128], strides = [1, 1]} : vector<8x384xf32> to vector<8x128xf32>
    %234 = arith.addf %233, %10 : vector<8x128xf32>
    %235 = arith.mulf %223, %234 : vector<8x128xf32>
    %236 = arith.addf %232, %235 : vector<8x128xf32>
    %237 = math.tanh %236 : vector<8x128xf32>
    %cst_72 = arith.constant 1.000000e+00 : f32
    %238 = vector.broadcast %cst_72 : f32 to vector<8x128xf32>
    %239 = arith.subf %238, %231 : vector<8x128xf32>
    %240 = arith.mulf %239, %237 : vector<8x128xf32>
    %241 = arith.mulf %231, %209 : vector<8x128xf32>
    %242 = arith.addf %240, %241 : vector<8x128xf32>
    %c56_73 = arith.constant 56 : index
    %c0_74 = arith.constant 0 : index
    %243 = vector.load %arg9[%c56_73, %c0_74] : memref<64x768xf32, #tpu.memory_space<vmem>>, vector<8x384xf32>
    %c0_75 = arith.constant 0 : index
    %c384_76 = arith.constant 384 : index
    %244 = vector.load %arg9[%c0_75, %c384_76] : memref<64x768xf32, #tpu.memory_space<vmem>>, vector<8x384xf32>
    %245 = arith.addf %243, %244 : vector<8x384xf32>
    %246 = arith.truncf %242 : vector<8x128xf32> to vector<8x128xbf16>
    %c0_77 = arith.constant 0 : index
    %c0_78 = arith.constant 0 : index
    %247 = vector.load %arg4[%c0_77, %c0_78] : memref<128x384xbf16, #tpu.memory_space<vmem>>, vector<128x384xbf16>
    %cst_79 = arith.constant dense<0.000000e+00> : vector<8x384xf32>
    %248 = tpu.matmul %246, %247, %cst_79 {dimension_numbers = #tpu.dot_dimension_numbers<[1], [0], [0], [1], [0, 0, 1, 1], [], []>} : vector<8x128xbf16>, vector<128x384xbf16>, vector<8x384xf32> -> vector<8x384xf32>
    %249 = vector.extract_strided_slice %245 {offsets = [0, 0], sizes = [8, 128], strides = [1, 1]} : vector<8x384xf32> to vector<8x128xf32>
    %250 = vector.extract_strided_slice %248 {offsets = [0, 0], sizes = [8, 128], strides = [1, 1]} : vector<8x384xf32> to vector<8x128xf32>
    %251 = arith.addf %249, %250 : vector<8x128xf32>
    %252 = arith.negf %251 : vector<8x128xf32>
    %253 = math.exp %252 : vector<8x128xf32>
    %cst_80 = arith.constant 1.000000e+00 : f32
    %254 = vector.broadcast %cst_80 : f32 to vector<8x128xf32>
    %255 = arith.addf %254, %253 : vector<8x128xf32>
    %256 = arith.divf %254, %255 : vector<8x128xf32>
    %257 = vector.extract_strided_slice %245 {offsets = [0, 128], sizes = [8, 128], strides = [1, 1]} : vector<8x384xf32> to vector<8x128xf32>
    %258 = vector.extract_strided_slice %248 {offsets = [0, 128], sizes = [8, 128], strides = [1, 1]} : vector<8x384xf32> to vector<8x128xf32>
    %259 = arith.addf %257, %258 : vector<8x128xf32>
    %260 = arith.negf %259 : vector<8x128xf32>
    %261 = math.exp %260 : vector<8x128xf32>
    %cst_81 = arith.constant 1.000000e+00 : f32
    %262 = vector.broadcast %cst_81 : f32 to vector<8x128xf32>
    %263 = arith.addf %262, %261 : vector<8x128xf32>
    %264 = arith.divf %262, %263 : vector<8x128xf32>
    %265 = vector.extract_strided_slice %245 {offsets = [0, 256], sizes = [8, 128], strides = [1, 1]} : vector<8x384xf32> to vector<8x128xf32>
    %266 = vector.extract_strided_slice %248 {offsets = [0, 256], sizes = [8, 128], strides = [1, 1]} : vector<8x384xf32> to vector<8x128xf32>
    %267 = arith.addf %266, %10 : vector<8x128xf32>
    %268 = arith.mulf %256, %267 : vector<8x128xf32>
    %269 = arith.addf %265, %268 : vector<8x128xf32>
    %270 = math.tanh %269 : vector<8x128xf32>
    %cst_82 = arith.constant 1.000000e+00 : f32
    %271 = vector.broadcast %cst_82 : f32 to vector<8x128xf32>
    %272 = arith.subf %271, %264 : vector<8x128xf32>
    %273 = arith.mulf %272, %270 : vector<8x128xf32>
    %274 = arith.mulf %264, %242 : vector<8x128xf32>
    %275 = arith.addf %273, %274 : vector<8x128xf32>
    %276 = arith.truncf %275 : vector<8x128xf32> to vector<8x128xbf16>
    %c0_83 = arith.constant 0 : index
    %c0_84 = arith.constant 0 : index
    %277 = vector.load %arg6[%c0_83, %c0_84] : memref<128x128xbf16, #tpu.memory_space<vmem>>, vector<128x128xbf16>
    %cst_85 = arith.constant dense<0.000000e+00> : vector<8x128xf32>
    %278 = tpu.matmul %276, %277, %cst_85 {dimension_numbers = #tpu.dot_dimension_numbers<[1], [0], [0], [1], [0, 0, 1, 1], [], []>} : vector<8x128xbf16>, vector<128x128xbf16>, vector<8x128xf32> -> vector<8x128xf32>
    %c0_86 = arith.constant 0 : index
    %c0_87 = arith.constant 0 : index
    %279 = vector.load %arg7[%c0_86, %c0_87] : memref<1x128xf32, #tpu.memory_space<vmem>>, vector<1x128xf32>
    %280 = vector.broadcast %279 : vector<1x128xf32> to vector<8x128xf32>
    %281 = arith.addf %278, %280 : vector<8x128xf32>
    %c0_88 = arith.constant 0 : index
    %c0_89 = arith.constant 0 : index
    %282 = vector.load %arg8[%c0_88, %c0_89] : memref<8x128xf32, #tpu.memory_space<vmem>>, vector<8x128xf32>
    tpu.vector_store %arg8[%c0_88, %c0_89], %281 {strides = array<i32>} : memref<8x128xf32, #tpu.memory_space<vmem>>, vector<8x128xf32>,
    return
  }
  func.func @transform_0(%arg0: i32) -> (i32, i32, i32) {
    %c0_i32 = arith.constant 0 : i32
    %c0_i32_0 = arith.constant 0 : i32
    %c0_i32_1 = arith.constant 0 : i32
    return %arg0, %c0_i32, %c0_i32_0 : i32, i32, i32
  }
  func.func @transform_1(%arg0: i32) -> (i32, i32) {
    %c0_i32 = arith.constant 0 : i32
    %c0_i32_0 = arith.constant 0 : i32
    %c0_i32_1 = arith.constant 0 : i32
    return %c0_i32, %c0_i32_0 : i32, i32
  }
  func.func @transform_2(%arg0: i32) -> (i32, i32) {
    %c0_i32 = arith.constant 0 : i32
    %c0_i32_0 = arith.constant 0 : i32
    %c0_i32_1 = arith.constant 0 : i32
    return %c0_i32, %c0_i32_0 : i32, i32
  }
  func.func @transform_3(%arg0: i32) -> (i32, i32) {
    %c0_i32 = arith.constant 0 : i32
    %c0_i32_0 = arith.constant 0 : i32
    %c0_i32_1 = arith.constant 0 : i32
    return %c0_i32, %c0_i32_0 : i32, i32
  }
  func.func @transform_4(%arg0: i32) -> (i32, i32) {
    %c0_i32 = arith.constant 0 : i32
    %c0_i32_0 = arith.constant 0 : i32
    %c0_i32_1 = arith.constant 0 : i32
    return %c0_i32, %c0_i32_0 : i32, i32
  }
  func.func @transform_5(%arg0: i32) -> (i32, i32) {
    %c0_i32 = arith.constant 0 : i32
    %c0_i32_0 = arith.constant 0 : i32
    %c0_i32_1 = arith.constant 0 : i32
    return %c0_i32, %c0_i32_0 : i32, i32
  }
  func.func @transform_6(%arg0: i32) -> (i32, i32) {
    %c0_i32 = arith.constant 0 : i32
    %c0_i32_0 = arith.constant 0 : i32
    %c0_i32_1 = arith.constant 0 : i32
    return %c0_i32, %c0_i32_0 : i32, i32
  }
  func.func @transform_7(%arg0: i32) -> (i32, i32) {
    %c0_i32 = arith.constant 0 : i32
    %c0_i32_0 = arith.constant 0 : i32
    return %arg0, %c0_i32 : i32, i32
  }
}

</mosaic_0001>

<bundles_post_ra>
// kernel: rnn_forward.1
= control target key start
LH: loop header
LB: loop body
LE: loop exit
PB: predicated region body
PF: predicated region fallthrough
CT: control target
= control target key end

     0   :  { %12 = vsyncpa [#allocation4], 0  ;;  %s3221_s0 = inlined_call_operand.vmem [shape: bf16[1,64,128], index: 0, kind: input, shape index: {}]   ;;  %s3222_s1 = inlined_call_operand.hbm [shape: bf16[128,768], index: 1, kind: input, shape index: {}]   ;;  %s3223_s2 = inlined_call_operand.vmem [shape: f32[1,768], index: 2, kind: input, shape index: {}]   ;;  %s3224_s3 = inlined_call_operand.hbm [shape: bf16[128,384], index: 3, kind: input, shape index: {}]   ;;  %s3225_s4 = inlined_call_operand.vmem [shape: f32[1,128], index: 4, kind: input, shape index: {}]   ;;  %s3226_s5 = inlined_call_operand.vmem [shape: bf16[128,128], index: 5, kind: input, shape index: {}]   ;;  %s3227_s6 = inlined_call_operand.vmem [shape: f32[1,128], index: 6, kind: input, shape index: {}]   ;;  %s3228_s7 = inlined_call_operand.vmem [shape: f32[8,128], index: 7, kind: output, shape index: {}]  }
   0x1   :  { %13 = vsyncpa [#allocation6], 0  ;;  %s2503_s24 = smov [#allocation3]   ;;  %s2455_s28 = scalar_lea.hbm %s3222_s1, 6144 }
   0x2   :  { %s21_s25 = sshll.u32 %s2503_s24, 4  ;;  %p2456_p0 = scmp.ne.s32.totalorder %s3222_s1, %s2455_s28  ;;  %s22_s25 = int_to_ptr.vmem [resolvable:$true] %s21_s25 }
   0x3   :  { %p2459_p1 = scmp.lt.u32.totalorder %s2455_s28, %s3222_s1 }
   0x5   :  { %p2461_p2 = pnand %p2459_p1, %p2456_p0 }
   0x7   :  { %2464 = shalt.err (!%p2461_p2)
}
   0x8   :  { %s2465_s10 = scalar_lea.vmem %s22_s25, 6144  ;;  %p2470_p4 = scmp.lt.s32.totalorder %s22_s25, %s22_s25 }
   0x9   :  { %p2466_p3 = scmp.ne.s32.totalorder %s22_s25, %s2465_s10  ;;  %p2471_p5 = scmp.lt.s32.totalorder %s2465_s10, %s2465_s10 }
   0xb   :  { %p2472_p6 = por %p2471_p5, %p2470_p4 }
   0xd   :  { %p2473_p7 = pnand %p2472_p6, %p2466_p3 }
   0xf   :  { %2476 = shalt.err (!%p2473_p7)
}
  0x10   :  { %s2504_s11 = smov 384   ;;  %s2505_s12 = smov 24  }
  0x11   :  { %27 = dma.hbm_to_vmem [thread:$0]  %s3222_s1, 6144, %s22_s25, [#allocation4], %s2504_s11, %s2504_s11, %s2505_s12  }
  0x12   :  { %s2506_s15 = smov [#allocation5]   ;;  %s2477_s19 = scalar_lea.hbm %s3224_s3, 3072 }
  0x13   :  { %s35_s16 = sshll.u32 %s2506_s15, 4  ;;  %p2478_p8 = scmp.ne.s32.totalorder %s3224_s3, %s2477_s19  ;;  %s36_s16 = int_to_ptr.vmem [resolvable:$true] %s35_s16 }
  0x14   :  { %p2481_p9 = scmp.lt.u32.totalorder %s2477_s19, %s3224_s3 }
  0x16   :  { %p2483_p10 = pnand %p2481_p9, %p2478_p8 }
  0x18   :  { %2486 = shalt.err (!%p2483_p10)
}
  0x19   :  { %s2487_s24 = scalar_lea.vmem %s36_s16, 3072  ;;  %p2492_p12 = scmp.lt.s32.totalorder %s36_s16, %s36_s16 }
  0x1a   :  { %p2488_p11 = scmp.ne.s32.totalorder %s36_s16, %s2487_s24  ;;  %p2493_p13 = scmp.lt.s32.totalorder %s2487_s24, %s2487_s24 }
  0x1c   :  { %p2494_p0 = por %p2493_p13, %p2492_p12 }
  0x1e   :  { %p2495_p1 = pnand %p2494_p0, %p2488_p11 }
  0x20   :  { %2498 = shalt.err (!%p2495_p1)
}
  0x21   :  { %s2507_s1 = smov 192   ;;  %s2508_s25 = smov 12  }
  0x22   :  { %41 = dma.hbm_to_vmem [thread:$0]  %s3224_s3, 3072, %s36_s16, [#allocation6], %s2507_s1, %s2507_s1, %s2508_s25  }
  0x23   :  { %2499 = dma.done.wait [#allocation4], 6144  }
  0x24   :  { %2500 = vsyncadd [#allocation4], 4294961152 }
  0x25   :  { %2501 = dma.done.wait [#allocation6], 3072  }
  0x26   :  { %2502 = vsyncadd [#allocation6], 4294964224  ;;  %v3229_v0 = vmov 0   ;;  %v2235_v1 = vld [vmem:[#allocation3 + $0x4] ss:$24 sps:$4 sm:$0xff]   ;;  %v2603_v44 = vld [vmem:[%s3221_s0 + $0x8] sm:$0xff]  }
  0x27   :  { %439 = vmatprep.mubr.bf16.mxu0 %v3229_v0  ;;  %512 = vmatprep.mubr.bf16.mxu1 %v3229_v0  ;;  %v2237_v2 = vld [vmem:[#allocation3 + $0xc] ss:$24 sps:$4 sm:$0xff]   ;;  %v2239_v3 = vld [vmem:[#allocation3] ss:$24 sps:$4 sm:$0xff]   ;;  %v2243_v6 = vld [vmem:[#allocation3 + $0x3c] ss:$24 sps:$4 sm:$0xff]  }
  0x28   :  { %407 = vmatprep.subr.bf16.mxu0 %v2235_v1  ;;  %v2240_v4 = vld [vmem:[#allocation3 + $0x8] ss:$24 sps:$4 sm:$0xff]   ;;  %480 = vmatprep.subr.bf16.mxu1 %v2237_v2  ;;  %v2241_v5 = vld [vmem:[#allocation3 + $0x34] ss:$24 sps:$4 sm:$0xff]   ;;  %v2246_v8 = vld [vmem:[#allocation3 + $0x38] ss:$24 sps:$4 sm:$0xff]  }
  0x29   :  { %408 = vmatpush1.bf16.msra.mxu0 %v2239_v3  ;;  %481 = vmatpush1.bf16.msra.mxu1 %v2240_v4  ;;  %v2245_v7 = vld [vmem:[#allocation3 + $0x30] ss:$24 sps:$4 sm:$0xff]   ;;  %v2247_v9 = vld [vmem:[#allocation3 + $0x64] ss:$24 sps:$4 sm:$0xff]   ;;  %v2251_v11 = vld [vmem:[#allocation3 + $0x60] ss:$24 sps:$4 sm:$0xff]  }
  0x2a   :  { %409 = vmatprep.subr.bf16.mxu0 %v2241_v5  ;;  %482 = vmatprep.subr.bf16.mxu1 %v2243_v6  ;;  %v2249_v10 = vld [vmem:[#allocation3 + $0x6c] ss:$24 sps:$4 sm:$0xff]   ;;  %v2252_v12 = vld [vmem:[#allocation3 + $0x68] ss:$24 sps:$4 sm:$0xff]   ;;  %v2255_v14 = vld [vmem:[#allocation3 + $0x9c] ss:$24 sps:$4 sm:$0xff]  }
  0x2b   :  { %v2253_v13 = vld [vmem:[#allocation3 + $0x94] ss:$24 sps:$4 sm:$0xff]   ;;  %v2257_v15 = vld [vmem:[#allocation3 + $0x90] ss:$24 sps:$4 sm:$0xff]   ;;  %v2259_v17 = vld [vmem:[#allocation3 + $0xc4] ss:$24 sps:$4 sm:$0xff]  }
  0x2c   :  { %v2258_v16 = vld [vmem:[#allocation3 + $0x98] ss:$24 sps:$4 sm:$0xff]   ;;  %v2261_v18 = vld [vmem:[#allocation3 + $0xcc] ss:$24 sps:$4 sm:$0xff]   ;;  %v2264_v20 = vld [vmem:[#allocation3 + $0xc8] ss:$24 sps:$4 sm:$0xff]  }
  0x2d   :  { %410 = vmatpush1.bf16.msra.mxu0 %v2245_v7  ;;  %483 = vmatpush1.bf16.msra.mxu1 %v2246_v8  ;;  %v2263_v19 = vld [vmem:[#allocation3 + $0xc0] ss:$24 sps:$4 sm:$0xff]   ;;  %v2265_v21 = vld [vmem:[#allocation3 + $0xf4] ss:$24 sps:$4 sm:$0xff]   ;;  %v2269_v23 = vld [vmem:[#allocation3 + $0xf0] ss:$24 sps:$4 sm:$0xff]  }
  0x2e   :  { %411 = vmatprep.subr.bf16.mxu0 %v2247_v9  ;;  %484 = vmatprep.subr.bf16.mxu1 %v2249_v10  ;;  %v2267_v22 = vld [vmem:[#allocation3 + $0xfc] ss:$24 sps:$4 sm:$0xff]   ;;  %v2270_v24 = vld [vmem:[#allocation3 + $0xf8] ss:$24 sps:$4 sm:$0xff]   ;;  %v2273_v26 = vld [vmem:[#allocation3 + $0x12c] ss:$24 sps:$4 sm:$0xff]  }
  0x2f   :  { %v2271_v25 = vld [vmem:[#allocation3 + $0x124] ss:$24 sps:$4 sm:$0xff]   ;;  %v2275_v27 = vld [vmem:[#allocation3 + $0x120] ss:$24 sps:$4 sm:$0xff]   ;;  %v2277_v29 = vld [vmem:[#allocation3 + $0x154] ss:$24 sps:$4 sm:$0xff]  }
  0x30   :  { %v2276_v28 = vld [vmem:[#allocation3 + $0x128] ss:$24 sps:$4 sm:$0xff]   ;;  %v2279_v30 = vld [vmem:[#allocation3 + $0x15c] ss:$24 sps:$4 sm:$0xff]   ;;  %v2282_v32 = vld [vmem:[#allocation3 + $0x158] ss:$24 sps:$4 sm:$0xff]  }
  0x31   :  { %412 = vmatpush1.bf16.msra.mxu0 %v2251_v11  ;;  %485 = vmatpush1.bf16.msra.mxu1 %v2252_v12  ;;  %v2281_v31 = vld [vmem:[#allocation3 + $0x150] ss:$24 sps:$4 sm:$0xff]   ;;  %v2286_v33 = vld [vmem:[#allocation3 + $0x14] ss:$24 sps:$4 sm:$0xff]   ;;  %v2583_v35 = vld [vmem:[%s3221_s0] sm:$0xff]   ;;  %v3231_v7 = vmov 0.0  }
  0x32   :  { %413 = vmatprep.subr.bf16.mxu0 %v2253_v13  ;;  %486 = vmatprep.subr.bf16.mxu1 %v2255_v14  ;;  %v2578_v34 = vld [vmem:[#allocation5 + $0x4] ss:$12 sps:$4 sm:$0xff]   ;;  %v2585_v37 = vld [vmem:[#allocation5] ss:$12 sps:$4 sm:$0xff]   ;;  %v2588_v39 = vld [vmem:[#allocation5 + $0x1c] ss:$12 sps:$4 sm:$0xff]  }
  0x33   :  { %3239 = vst [vmem:[#allocation9_spill] sm:$0xff] %v2578_v34  ;;  %v2284_v36 = vld [vmem:[#allocation3 + $0x10] ss:$24 sps:$4 sm:$0xff]   ;;  %v2292_v38 = vld [vmem:[#allocation3 + $0x44] ss:$24 sps:$4 sm:$0xff]   ;;  %vm2511_vm0 = vmmov 0  }
  0x34   :  { %v2290_v40 = vld [vmem:[#allocation3 + $0x40] ss:$24 sps:$4 sm:$0xff]   ;;  %v2299_v42 = vld [vmem:[#allocation3 + $0x74] ss:$24 sps:$4 sm:$0xff]   ;;  %v2297_v45 = vld [vmem:[#allocation3 + $0x70] ss:$24 sps:$4 sm:$0xff]  }
  0x35   :  { %414 = vmatpush1.bf16.msra.mxu0 %v2257_v15  ;;  %487 = vmatpush1.bf16.msra.mxu1 %v2258_v16  ;;  %v2593_v41 = vld [vmem:[#allocation5 + $0x18] ss:$12 sps:$4 sm:$0xff]   ;;  %v2596_v43 = vld [vmem:[#allocation5 + $0x34] ss:$12 sps:$4 sm:$0xff]   ;;  %v2605_v46 = vld [vmem:[#allocation5 + $0x30] ss:$12 sps:$4 sm:$0xff]   ;;  %v113_v15 = vlaneseq }
  0x36   :  { %415 = vmatprep.subr.bf16.mxu0 %v2259_v17  ;;  %488 = vmatprep.subr.bf16.mxu1 %v2261_v18  ;;  %v2305_v47 = vld [vmem:[#allocation3 + $0xa4] ss:$24 sps:$4 sm:$0xff]   ;;  %v2609_v48 = vld [vmem:[#allocation5 + $0x4c] ss:$12 sps:$4 sm:$0xff]   ;;  %v2613_v50 = vld [vmem:[#allocation5 + $0x48] ss:$12 sps:$4 sm:$0xff]  }
  0x37   :  { %v2303_v49 = vld [vmem:[#allocation3 + $0xa0] ss:$24 sps:$4 sm:$0xff]   ;;  %v2312_v51 = vld [vmem:[#allocation3 + $0xd4] ss:$24 sps:$4 sm:$0xff]   ;;  %v2617_v52 = vld [vmem:[#allocation5 + $0x64] ss:$12 sps:$4 sm:$0xff]  }
  0x38   :  { %v2624_v53 = vld [vmem:[%s3221_s0 + $0x10] sm:$0xff]   ;;  %v2626_v55 = vld [vmem:[#allocation5 + $0x60] ss:$12 sps:$4 sm:$0xff]   ;;  %v2318_v56 = vld [vmem:[#allocation3 + $0x104] ss:$24 sps:$4 sm:$0xff]   ;;  %v2742_v16 = vshrl.u32 %v113_v15, 7 }
  0x39   :  { %416 = vmatpush1.bf16.msra.mxu0 %v2263_v19  ;;  %489 = vmatpush1.bf16.msra.mxu1 %v2264_v20  ;;  %v2310_v54 = vld [vmem:[#allocation3 + $0xd0] ss:$24 sps:$4 sm:$0xff]   ;;  %v2316_v58 = vld [vmem:[#allocation3 + $0x100] ss:$24 sps:$4 sm:$0xff]   ;;  %v2325_v60 = vld [vmem:[#allocation3 + $0x134] ss:$24 sps:$4 sm:$0xff]  }
  0x3a   :  { %417 = vmatprep.subr.bf16.mxu0 %v2265_v21  ;;  %490 = vmatprep.subr.bf16.mxu1 %v2267_v22  ;;  %v2630_v57 = vld [vmem:[#allocation5 + $0x7c] ss:$12 sps:$4 sm:$0xff]   ;;  %v2634_v59 = vld [vmem:[#allocation5 + $0x78] ss:$12 sps:$4 sm:$0xff]   ;;  %v2643_v62 = vld [vmem:[#allocation5 + $0x94] ss:$12 sps:$4 sm:$0xff]  }
  0x3b   :  { %v2641_v61 = vld [vmem:[%s3221_s0 + $0x18] sm:$0xff]   ;;  %v2323_v63 = vld [vmem:[#allocation3 + $0x130] ss:$24 sps:$4 sm:$0xff]   ;;  %v2669_v8 = vld [vmem:[#allocation5 + $0x20] ss:$12 sps:$4 sm:$0xff]   ;;  %v127_v17 = vsub.s32 3, %v2742_v16 }
  0x3c   :  { %v2647_v1 = vld [vmem:[#allocation5 + $0x90] ss:$12 sps:$4 sm:$0xff]   ;;  %v2649_v3 = vld [vmem:[#allocation5 + $0xac] ss:$12 sps:$4 sm:$0xff]   ;;  %v2656_v5 = vld [vmem:[#allocation5 + $0xa8] ss:$12 sps:$4 sm:$0xff]  }
  0x3d   :  { %418 = vmatpush1.bf16.msra.mxu0 %v2269_v23  ;;  %491 = vmatpush1.bf16.msra.mxu1 %v2270_v24  ;;  %v2331_v2 = vld [vmem:[#allocation3 + $0x164] ss:$24 sps:$4 sm:$0xff]   ;;  %v2329_v4 = vld [vmem:[#allocation3 + $0x160] ss:$24 sps:$4 sm:$0xff]   ;;  %3240 = vst [vmem:[#allocation10_spill] sm:$0xff] %v2656_v5  ;;  %v123_v18 = vsub.s32 2, %v2742_v16 }
  0x3e   :  { %419 = vmatprep.subr.bf16.mxu0 %v2271_v25  ;;  %492 = vmatprep.subr.bf16.mxu1 %v2273_v26  ;;  %v2662_v6 = vld [vmem:[#allocation5 + $0x8] ss:$12 sps:$4 sm:$0xff]   ;;  %v2677_v9 = vld [vmem:[#allocation5 + $0x38] ss:$12 sps:$4 sm:$0xff]   ;;  %v2684_v10 = vld [vmem:[#allocation5 + $0x50] ss:$12 sps:$4 sm:$0xff]  }
  0x3f   :  { %v2691_v11 = vld [vmem:[#allocation5 + $0x68] ss:$12 sps:$4 sm:$0xff]   ;;  %v2698_v12 = vld [vmem:[#allocation5 + $0x80] ss:$12 sps:$4 sm:$0xff]   ;;  %v2705_v13 = vld [vmem:[#allocation5 + $0x98] ss:$12 sps:$4 sm:$0xff]  }
  0x40   :  { %v2712_v14 = vld [vmem:[#allocation5 + $0xb0] ss:$12 sps:$4 sm:$0xff]   ;;  %v2749_v19 = vld [vmem:[%s3223_s2] sm:$0x3f]  ;;  %v115_v20 = vsub.s32 0, %v2742_v16  ;;  %v119_v21 = vsub.s32 1, %v2742_v16 }
  0x41   :  { %420 = vmatpush1.bf16.msra.mxu0 %v2275_v27  ;;  %493 = vmatpush1.bf16.msra.mxu1 %v2276_v28  ;;  %3241 = vst [vmem:[#allocation11_spill] sm:$0xff] %v2712_v14  ;;  %v2754_v22 = vrot.slane %v2749_v19, %v127_v17  ;;  %v2757_v23 = vrot.slane %v2749_v19, %v123_v18 }
  0x42   :  { %421 = vmatprep.subr.bf16.mxu0 %v2277_v29  ;;  %494 = vmatprep.subr.bf16.mxu1 %v2279_v30  ;;  %v2764_v26 = vrot.slane %v2749_v19, %v115_v20  ;;  %v2769_v29 = vrot.slane %v2749_v19, %v119_v21 }
  0x45   :  { %422 = vmatpush1.bf16.msra.mxu0 %v2281_v31  ;;  %495 = vmatpush1.bf16.msra.mxu1 %v2282_v32 }
  0x46   :  { %553 = vmatprep.subr.bf16.mxu0 %v2286_v33  ;;  %850 = vmatprep.subr.bf16.mxu1 %v2578_v34 }
  0x48   :  { %440 = vmatmul.mubr.bf16.vlgmr.msra.gmra.mrb[0].mxu0 %v2583_v35  ;;  %513 = vmatmul.mubr.bf16.vlgmr.msra.gmra.mrb[0].mxu1 %v2583_v35 }
  0x49   :  { %554 = vmatpush1.bf16.msra.mxu0 %v2284_v36  ;;  %851 = vmatpush1.bf16.msra.mxu1 %v2585_v37 }
  0x4a   :  { %555 = vmatprep.subr.bf16.mxu0 %v2292_v38  ;;  %852 = vmatprep.subr.bf16.mxu1 %v2588_v39 }
  0x4b   :  { %449 = vmatprep.mubr.bf16.mxu0 %v3229_v0  ;;  %522 = vmatprep.mubr.bf16.mxu1 %v3229_v0 }
  0x4d   :  { %556 = vmatpush1.bf16.msra.mxu0 %v2290_v40  ;;  %853 = vmatpush1.bf16.msra.mxu1 %v2593_v41 }
  0x4e   :  { %557 = vmatprep.subr.bf16.mxu0 %v2299_v42  ;;  %854 = vmatprep.subr.bf16.mxu1 %v2596_v43 }
  0x50   :  { %450 = vmatmul.mubr.bf16.gmra.mrb[4].mxu0 %v2603_v44  ;;  %523 = vmatmul.mubr.bf16.gmra.mrb[4].mxu1 %v2603_v44 }
  0x51   :  { %558 = vmatpush1.bf16.msra.mxu0 %v2297_v45  ;;  %855 = vmatpush1.bf16.msra.mxu1 %v2605_v46 }
  0x52   :  { %559 = vmatprep.subr.bf16.mxu0 %v2305_v47  ;;  %856 = vmatprep.subr.bf16.mxu1 %v2609_v48 }
  0x53   :  { %459 = vmatprep.mubr.bf16.mxu0 %v3229_v0  ;;  %532 = vmatprep.mubr.bf16.mxu1 %v3229_v0 }
  0x55   :  { %560 = vmatpush1.bf16.msra.mxu0 %v2303_v49  ;;  %857 = vmatpush1.bf16.msra.mxu1 %v2613_v50 }
  0x56   :  { %561 = vmatprep.subr.bf16.mxu0 %v2312_v51  ;;  %858 = vmatprep.subr.bf16.mxu1 %v2617_v52 }
  0x58   :  { %460 = vmatmul.mubr.bf16.gmra.mrb[8].mxu0 %v2624_v53  ;;  %533 = vmatmul.mubr.bf16.gmra.mrb[8].mxu1 %v2624_v53 }
  0x59   :  { %562 = vmatpush1.bf16.msra.mxu0 %v2310_v54  ;;  %859 = vmatpush1.bf16.msra.mxu1 %v2626_v55 }
  0x5a   :  { %563 = vmatprep.subr.bf16.mxu0 %v2318_v56  ;;  %860 = vmatprep.subr.bf16.mxu1 %v2630_v57 }
  0x5b   :  { %469 = vmatprep.mubr.bf16.mxu0 %v3229_v0  ;;  %542 = vmatprep.mubr.bf16.mxu1 %v3229_v0 }
  0x5d   :  { %564 = vmatpush1.bf16.msra.mxu0 %v2316_v58  ;;  %861 = vmatpush1.bf16.msra.mxu1 %v2634_v59 }
  0x5e   :  { %565 = vmatprep.subr.bf16.mxu0 %v2325_v60  ;;  %862 = vmatprep.subr.bf16.mxu1 %v2643_v62 }
  0x60   :  { %470 = vmatmul.mubr.bf16.gmra.mrb[12].mxu0 %v2641_v61  ;;  %543 = vmatmul.mubr.bf16.gmra.mrb[12].mxu1 %v2641_v61 }
  0x61   :  { %566 = vmatpush1.bf16.msra.mxu0 %v2323_v63  ;;  %863 = vmatpush1.bf16.msra.mxu1 %v2647_v1 }
  0x62   :  { %567 = vmatprep.subr.bf16.mxu0 %v2331_v2  ;;  %864 = vmatprep.subr.bf16.mxu1 %v2649_v3 }
  0x63   :  { %585 = vmatprep.mubr.bf16.mxu0 %v3229_v0  ;;  %882 = vmatprep.mubr.bf16.mxu1 %v3229_v0 }
  0x65   :  { %568 = vmatpush1.bf16.msra.mxu0 %v2329_v4  ;;  %865 = vmatpush1.bf16.msra.mxu1 %v2656_v5 }
  0x66   :  { %2046 = vmatprep.subr.bf16.mxu0 %v3231_v7  ;;  %963 = vmatprep.subr.bf16.mxu1 %v2578_v34 }
  0x68   :  { %586 = vmatmul.mubr.bf16.vlgmr.msra.gmra.mrb[16].mxu0 %v2583_v35  ;;  %883 = vmatmul.mubr.bf16.vlgmr.msra.gmra.mrb[16].mxu1 %v3229_v0 }
  0x69   :  { %2047 = vmatpush3.bf16.msra.mxu0 %v2662_v6  ;;  %595 = vmatprep.mubr.bf16.mxu0 %v3229_v0 }
  0x6a   :  { %2048 = vmatprep.subr.bf16.mxu0 %v3231_v7  ;;  %964 = vmatpush1.bf16.msra.mxu1 %v2585_v37 }
  0x6b   :  { %965 = vmatprep.subr.bf16.mxu1 %v2588_v39  ;;  %995 = vmatprep.mubr.bf16.mxu1 %v3229_v0 }
  0x6d   :  { %2049 = vmatpush3.bf16.msra.mxu0 %v2669_v8 }
  0x6e   :  { %2050 = vmatprep.subr.bf16.mxu0 %v3231_v7  ;;  %966 = vmatpush1.bf16.msra.mxu1 %v2593_v41 }
  0x6f   :  { %967 = vmatprep.subr.bf16.mxu1 %v2596_v43 }
  0x70   :  { %596 = vmatmul.mubr.bf16.gmra.mrb[20].mxu0 %v2603_v44 }
  0x71   :  { %2051 = vmatpush3.bf16.msra.mxu0 %v2677_v9  ;;  %605 = vmatprep.mubr.bf16.mxu0 %v3229_v0 }
  0x72   :  { %2052 = vmatprep.subr.bf16.mxu0 %v3231_v7  ;;  %968 = vmatpush1.bf16.msra.mxu1 %v2605_v46 }
  0x73   :  { %969 = vmatprep.subr.bf16.mxu1 %v2609_v48 }
  0x75   :  { %2053 = vmatpush3.bf16.msra.mxu0 %v2684_v10 }
  0x76   :  { %2054 = vmatprep.subr.bf16.mxu0 %v3231_v7  ;;  %970 = vmatpush1.bf16.msra.mxu1 %v2613_v50 }
  0x77   :  { %971 = vmatprep.subr.bf16.mxu1 %v2617_v52 }
  0x78   :  { %606 = vmatmul.mubr.bf16.gmra.mrb[24].mxu0 %v2624_v53 }
  0x79   :  { %2055 = vmatpush3.bf16.msra.mxu0 %v2691_v11  ;;  %615 = vmatprep.mubr.bf16.mxu0 %v3229_v0 }
  0x7a   :  { %2056 = vmatprep.subr.bf16.mxu0 %v3231_v7  ;;  %972 = vmatpush1.bf16.msra.mxu1 %v2626_v55 }
  0x7b   :  { %973 = vmatprep.subr.bf16.mxu1 %v2630_v57 }
  0x7d   :  { %2057 = vmatpush3.bf16.msra.mxu0 %v2698_v12 }
  0x7e   :  { %2058 = vmatprep.subr.bf16.mxu0 %v3231_v7  ;;  %974 = vmatpush1.bf16.msra.mxu1 %v2634_v59 }
  0x7f   :  { %975 = vmatprep.subr.bf16.mxu1 %v2643_v62 }
  0x80   :  { %616 = vmatmul.mubr.bf16.gmra.mrb[28].mxu0 %v2641_v61 }
  0x81   :  { %2059 = vmatpush3.bf16.msra.mxu0 %v2705_v13  ;;  %2062 = vmatprep.mubr.msk.bf16.mxu0 %vm2511_vm0, %v3231_v7 }
  0x82   :  { %2060 = vmatprep.subr.bf16.mxu0 %v3231_v7  ;;  %976 = vmatpush1.bf16.msra.mxu1 %v2647_v1 }
  0x83   :  { %977 = vmatprep.subr.bf16.mxu1 %v2649_v3 }
  0x85   :  { %2061 = vmatpush3.bf16.msra.mxu0 %v2712_v14 }
  0x86   :  { %2066 = vmatprep.subr.bf16.mxu0 %v3231_v7  ;;  %978 = vmatpush1.bf16.msra.mxu1 %v2656_v5 }
  0x87   :  { %1076 = vmatprep.subr.bf16.mxu1 %v2578_v34 }
  0x88   :  { %2063 = vmatmul.mubr.bf16.vlgmr.msra.gmra.mrb[32].mxu0 %v3229_v0 }
  0x89   :  { %2067 = vmatpush3.bf16.msra.mxu0 %v2662_v6  ;;  %2082 = vmatprep.mubr.msk.bf16.mxu0 %vm2511_vm0, %v3231_v7 }
  0x8a   :  { %2068 = vmatprep.subr.bf16.mxu0 %v3231_v7 }
  0x8d   :  { %2069 = vmatpush3.bf16.msra.mxu0 %v2669_v8 }
  0x8e   :  { %2070 = vmatprep.subr.bf16.mxu0 %v3231_v7 }
  0x91   :  { %2071 = vmatpush3.bf16.msra.mxu0 %v2677_v9 }
  0x92   :  { %2072 = vmatprep.subr.bf16.mxu0 %v3231_v7 }
  0x95   :  { %2073 = vmatpush3.bf16.msra.mxu0 %v2684_v10 }
  0x96   :  { %2074 = vmatprep.subr.bf16.mxu0 %v3231_v7 }
  0x99   :  { %2075 = vmatpush3.bf16.msra.mxu0 %v2691_v11 }
  0x9a   :  { %2076 = vmatprep.subr.bf16.mxu0 %v3231_v7 }
  0x9d   :  { %2077 = vmatpush3.bf16.msra.mxu0 %v2698_v12 }
  0x9e   :  { %2078 = vmatprep.subr.bf16.mxu0 %v3231_v7 }
  0xa1   :  { %2079 = vmatpush3.bf16.msra.mxu0 %v2705_v13 }
  0xa2   :  { %2080 = vmatprep.subr.bf16.mxu0 %v3231_v7 }
  0xa5   :  { %2081 = vmatpush3.bf16.msra.mxu0 %v2712_v14 }
  0xa6   :  { %2086 = vmatprep.subr.bf16.mxu0 %v3231_v7 }
 0x11b   :  { %v2759_v24 = vpop.f32.mrb[0].mxu0  ;;  %v2761_v25 = vpop.f32.mrb[0].mxu1 }
 0x11c   :  { %v2766_v27 = vpop.f32.mrb[1].mxu0  ;;  %v516_v28 = vpop.f32.mrb[1].mxu1 }
 0x11d   :  { %v445_v30 = vpop.f32.mrb[2].mxu0  ;;  %v2772_v31 = vadd.f32 %v516_v28, %v2754_v22  ;;  %v518_v32 = vpop.f32.mrb[2].mxu1 }
 0x11e   :  { %v446_v33 = vadd.f32 %v445_v30, %v2764_v26  ;;  %v447_v35 = vpop.f32.mrb[3].mxu0  ;;  %v2776_v36 = vadd.f32 %v518_v32, %v2757_v23  ;;  %v520_v38 = vpop.f32.mrb[3].mxu1 }
 0x11f   :  { %v2779_v40 = vadd.f32 %v447_v35, %v2769_v29  ;;  %v521_v42 = vadd.f32 %v520_v38, %v2754_v22 }
 0x123   :  { %v451_v44 = vpop.f32.mrb[4].mxu0  ;;  %v524_v45 = vpop.f32.mrb[4].mxu1 }
 0x124   :  { %v452_v47 = vadd.f32 %v451_v44, %v2764_v26  ;;  %v453_v49 = vpop.f32.mrb[5].mxu0  ;;  %v2784_v51 = vadd.f32 %v524_v45, %v2757_v23  ;;  %v526_v53 = vpop.f32.mrb[5].mxu1 }
 0x125   :  { %v2787_v54 = vadd.f32 %v453_v49, %v2769_v29  ;;  %v455_v56 = vpop.f32.mrb[6].mxu0  ;;  %v527_v58 = vadd.f32 %v526_v53, %v2754_v22  ;;  %v528_v60 = vpop.f32.mrb[6].mxu1 }
 0x126   :  { %v456_v61 = vadd.f32 %v455_v56, %v2764_v26  ;;  %v457_v63 = vpop.f32.mrb[7].mxu0  ;;  %v2792_v2 = vadd.f32 %v528_v60, %v2757_v23  ;;  %v530_v4 = vpop.f32.mrb[7].mxu1 }
 0x127   :  { %v2795_v15 = vadd.f32 %v457_v63, %v2769_v29  ;;  %v531_v17 = vadd.f32 %v530_v4, %v2754_v22 }
 0x12b   :  { %v461_v18 = vpop.f32.mrb[8].mxu0  ;;  %v534_v20 = vpop.f32.mrb[8].mxu1 }
 0x12c   :  { %v462_v21 = vadd.f32 %v461_v18, %v2764_v26  ;;  %v2800_v28 = vadd.f32 %v534_v20, %v2757_v23  ;;  %v463_v30 = vpop.f32.mrb[9].mxu0  ;;  %v536_v32 = vpop.f32.mrb[9].mxu1 }
 0x12d   :  { %v2803_v35 = vadd.f32 %v463_v30, %v2769_v29  ;;  %v537_v38 = vadd.f32 %v536_v32, %v2754_v22  ;;  %v465_v44 = vpop.f32.mrb[10].mxu0  ;;  %v538_v45 = vpop.f32.mrb[10].mxu1 }
 0x12e   :  { %v466_v49 = vadd.f32 %v465_v44, %v2764_v26  ;;  %v539_v53 = vadd.f32 %v538_v45, %v2757_v23  ;;  %v467_v56 = vpop.f32.mrb[11].mxu0  ;;  %v540_v60 = vpop.f32.mrb[11].mxu1  ;;  %v2808_v63 = vadd.f32 %v531_v17, %v462_v21  ;;  %v131_v17 = vsub.s32 4, %v2742_v16 }
 0x12f   :  { %v468_v4 = vadd.f32 %v467_v56, %v2769_v29  ;;  %v541_v18 = vadd.f32 %v540_v60, %v2754_v22  ;;  %v2812_v20 = vadd.f32 %v537_v38, %v456_v61 }
 0x130   :  { %3242 = vst [vmem:[#allocation12_spill] sm:$0xff] %v2808_v63  ;;  %v2814_v30 = vadd.f32 %v527_v58, %v466_v49  ;;  %v135_v58 = vsub.s32 5, %v2742_v16  ;;  %v132_v63 = vrot.slane %v2749_v19, %v131_v17 }
 0x131   :  { %3243 = vst [vmem:[#allocation13_spill] sm:$0xff] %v2812_v20  ;;  %v2816_v0 = vadd.f32 %v541_v18, %v452_v47 }
 0x132   :  { %3244 = vst [vmem:[#allocation14_spill] sm:$0xff] %v2814_v30 }
 0x133   :  { %3245 = vst [vmem:[#allocation15_spill] sm:$0xff] %v2816_v0  ;;  %v471_v32 = vpop.f32.mrb[12].mxu0  ;;  %v544_v7 = vpop.f32.mrb[12].mxu1 }
 0x134   :  { %v472_v44 = vadd.f32 %v471_v32, %v2764_v26  ;;  %v545_v45 = vadd.f32 %v544_v7, %v2757_v23  ;;  %v473_v34 = vpop.f32.mrb[13].mxu0  ;;  %v546_v14 = vpop.f32.mrb[13].mxu1  ;;  %v442_v7 = vadd.f32 %v2759_v24, %v2764_v26 }
 0x135   :  { %v474_v21 = vadd.f32 %v473_v34, %v2769_v29  ;;  %v547_v56 = vadd.f32 %v546_v14, %v2754_v22  ;;  %v475_v61 = vpop.f32.mrb[14].mxu0  ;;  %v548_v38 = vpop.f32.mrb[14].mxu1 }
 0x136   :  { %v476_v47 = vadd.f32 %v475_v61, %v2764_v26  ;;  %v549_v49 = vadd.f32 %v548_v38, %v2757_v23  ;;  %v477_v60 = vpop.f32.mrb[15].mxu0  ;;  %v550_v18 = vpop.f32.mrb[15].mxu1  ;;  %v2826_v32 = vadd.f32 %v521_v42, %v472_v44  ;;  %v136_v38 = vrot.slane %v2749_v19, %v135_v58 }
 0x137   :  { %v478_v30 = vadd.f32 %v477_v60, %v2769_v29  ;;  %v551_v34 = vadd.f32 %v550_v18, %v2754_v22  ;;  %v2832_v14 = vadd.f32 %v547_v56, %v446_v33 }
 0x138   :  { %3246 = vst [vmem:[#allocation16_spill] sm:$0xff] %v2826_v32  ;;  %v2836_v16 = vadd.f32 %v2772_v31, %v476_v47 }
 0x139   :  { %v687_v61 = vadd.f32 %v551_v34, %v442_v7 }
 0x13b   :  { %v587_v20 = vpop.f32.mrb[16].mxu0  ;;  %v884_v42 = vpop.f32.mrb[16].mxu1 }
 0x13c   :  { %v588_v44 = vadd.f32 %v587_v20, %v132_v63  ;;  %v931_v32 = vadd.f32 %v884_v42, %v687_v61  ;;  %v589_v0 = vpop.f32.mrb[17].mxu0  ;;  %v886_v24 = vpop.f32.mrb[17].mxu1 }
 0x13d   :  { %v590_v26 = vadd.f32 %v589_v0, %v136_v38  ;;  %v591_v60 = vpop.f32.mrb[18].mxu0  ;;  %v888_v5 = vpop.f32.mrb[18].mxu1 }
 0x13e   :  { %v1940_v22 = vmul.f32 -1.442695, %v931_v32  ;;  %v592_v33 = vadd.f32 %v591_v60, %v132_v63  ;;  %v593_v56 = vpop.f32.mrb[19].mxu0  ;;  %v889_v18 = vpop.f32.mrb[19].mxu1  ;;  %v2839_v17 = vadd.f32 %v588_v44, %v478_v30 }
 0x13f   :  { %v2841_v31 = vadd.f32 %v590_v26, %v549_v49  ;;  %v594_v47 = vadd.f32 %v593_v56, %v136_v38 }
 0x140   :  { %v2843_v7 = vadd.f32 %v592_v33, %v474_v21  ;;  %2351 = vpow2.f32 %v1940_v22 }
 0x141   :  { %v2845_v19 = vadd.f32 %v594_v47, %v545_v45 }
 0x143   :  { %v597_v20 = vpop.f32.mrb[20].mxu0 }
 0x144   :  { %v598_v58 = vadd.f32 %v597_v20, %v132_v63  ;;  %v599_v34 = vpop.f32.mrb[21].mxu0 }
 0x145   :  { %v600_v0 = vadd.f32 %v599_v34, %v136_v38  ;;  %v601_v61 = vpop.f32.mrb[22].mxu0 }
 0x146   :  { %v602_v5 = vadd.f32 %v601_v61, %v132_v63  ;;  %v603_v32 = vpop.f32.mrb[23].mxu0  ;;  %v2847_v42 = vadd.f32 %v598_v58, %v468_v4 }
 0x147   :  { %v2849_v60 = vadd.f32 %v600_v0, %v539_v53  ;;  %v604_v30 = vadd.f32 %v603_v32, %v136_v38 }
 0x148   :  { %v2852_v49 = vadd.f32 %v602_v5, %v2803_v35 }
 0x149   :  { %v2855_v21 = vadd.f32 %v604_v30, %v2800_v28 }
 0x14a   :  { %v2352_v44 = vpop.eup %2351 }
 0x14b   :  { %v607_v45 = vpop.f32.mrb[24].mxu0  ;;  %v935_v53 = vadd.f32 1.0, %v2352_v44 }
 0x14c   :  { %v608_v26 = vadd.f32 %v607_v45, %v132_v63  ;;  %v609_v22 = vpop.f32.mrb[25].mxu0 }
 0x14d   :  { %v610_v33 = vadd.f32 %v609_v22, %v136_v38  ;;  %v611_v56 = vpop.f32.mrb[26].mxu0  ;;  %2353 = vrcp.f32 %v935_v53 }
 0x14e   :  { %v612_v18 = vadd.f32 %v611_v56, %v132_v63  ;;  %v613_v47 = vpop.f32.mrb[27].mxu0  ;;  %v2858_v4 = vadd.f32 %v608_v26, %v2795_v15  ;;  %v444_v15 = vadd.f32 %v2766_v27, %v2769_v29 }
 0x14f   :  { %v2861_v20 = vadd.f32 %v610_v33, %v2792_v2  ;;  %v614_v35 = vadd.f32 %v613_v47, %v136_v38  ;;  %v2882_v33 = vld [vmem:[%s3225_s4] ss:$0 sm:$0xff] }
 0x150   :  { %v2864_v58 = vadd.f32 %v612_v18, %v2787_v54  ;;  %v515_v54 = vadd.f32 %v2761_v25, %v2757_v23 }
 0x151   :  { %v2867_v28 = vadd.f32 %v614_v35, %v2784_v51 }
 0x153   :  { %v617_v34 = vpop.f32.mrb[28].mxu0 }
 0x154   :  { %v618_v0 = vadd.f32 %v617_v34, %v132_v63  ;;  %v619_v61 = vpop.f32.mrb[29].mxu0 }
 0x155   :  { %v620_v5 = vadd.f32 %v619_v61, %v136_v38  ;;  %v621_v32 = vpop.f32.mrb[30].mxu0 }
 0x156   :  { %v622_v30 = vadd.f32 %v621_v32, %v132_v63  ;;  %v623_v45 = vpop.f32.mrb[31].mxu0  ;;  %v2872_v2 = vadd.f32 %v618_v0, %v2779_v40 }
 0x157   :  { %v2877_v51 = vadd.f32 %v620_v5, %v2776_v36  ;;  %v624_v44 = vadd.f32 %v623_v45, %v136_v38  ;;  %v2354_v18 = vpop.eup %2353  ;;  %v3249_v45 = vld [vmem:[#allocation10_spill] sm:$0xff] }
 0x158   :  { %v688_v26 = vadd.f32 %v622_v30, %v444_v15  ;;  %v3247_v15 = vmov 0.0   ;;  %v3248_v30 = vmov 0  }
 0x159   :  { %v689_v22 = vadd.f32 %v624_v44, %v515_v54  ;;  %v3250_v54 = vld [vmem:[#allocation11_spill] sm:$0xff]  ;;  %v3251_v44 = vld [vmem:[#allocation9_spill] sm:$0xff] }
 0x15a   :  { %v938_v27 = vadd.f32 %v886_v24, %v688_v26 }
 0x15b   :  { %v925_v29 = vpop.f32.mrb[32].mxu0 }
 0x15c   :  { %v1941_v63 = vmul.f32 -1.442695, %v938_v27  ;;  %v945_v40 = vadd.f32 %v2882_v33, %v925_v29  ;;  %v2064_v56 = vpop.f32.mrb[33].mxu0 }
 0x15d   :  { %v928_v47 = vpop.f32.mrb[34].mxu0 }
 0x15e   :  { %2355 = vpow2.f32 %v1941_v63  ;;  %v946_v23 = vmul.f32 %v2354_v18, %v945_v40  ;;  %v2065_v25 = vpop.f32.mrb[35].mxu0 }
 0x160   :  { %v947_v36 = vadd.f32 %v946_v23, %v689_v22 }
 0x168   :  { %v2356_v38 = vpop.eup %2355 }
 0x169   :  { %v942_v53 = vadd.f32 1.0, %v2356_v38 }
 0x16b   :  { %2357 = vrcp.f32 %v942_v53 }
 0x16c   :  { %2359 = vtanh.f32 %v947_v36 }
 0x175   :  { %v2358_v35 = vpop.eup %2357 }
 0x176   :  { %v949_v34 = vsub.f32 1.0, %v2358_v35  ;;  %v2360_v0 = vpop.eup %2359  ;;  %v951_v24 = vmul.f32 0.0, %v2358_v35 }
 0x178   :  { %v950_v61 = vmul.f32 %v2360_v0, %v949_v34 }
 0x17a   :  { %v2885_v5 = vadd.f32 %v951_v24, %v950_v61 }
 0x17c   :  { %v962_v32 = vpack.c.bf16 %v2885_v5, %v2885_v5 }
 0x17e   :  { %996 = vmatmul.mubr.bf16.vlgmr.msra.gmra.mrb[20].mxu1 %v962_v32  ;;  %2083 = vmatmul.mubr.bf16.vlgmr.msra.gmra.mrb[36].mxu0 %v962_v32 }
 0x17f   :  { %1077 = vmatpush1.bf16.msra.mxu1 %v2585_v37  ;;  %2087 = vmatpush3.bf16.msra.mxu0 %v2662_v6 }
 0x180   :  { %1078 = vmatprep.subr.bf16.mxu1 %v2588_v39  ;;  %2088 = vmatprep.subr.bf16.mxu0 %v3247_v15 }
 0x181   :  { %1108 = vmatprep.mubr.bf16.mxu1 %v3248_v30  ;;  %2102 = vmatprep.mubr.msk.bf16.mxu0 %vm2511_vm0, %v3247_v15 }
 0x183   :  { %1079 = vmatpush1.bf16.msra.mxu1 %v2593_v41  ;;  %2089 = vmatpush3.bf16.msra.mxu0 %v2669_v8 }
 0x184   :  { %1080 = vmatprep.subr.bf16.mxu1 %v2596_v43  ;;  %2090 = vmatprep.subr.bf16.mxu0 %v3247_v15 }
 0x187   :  { %1081 = vmatpush1.bf16.msra.mxu1 %v2605_v46  ;;  %2091 = vmatpush3.bf16.msra.mxu0 %v2677_v9 }
 0x188   :  { %1082 = vmatprep.subr.bf16.mxu1 %v2609_v48  ;;  %2092 = vmatprep.subr.bf16.mxu0 %v3247_v15 }
 0x18b   :  { %1083 = vmatpush1.bf16.msra.mxu1 %v2613_v50  ;;  %2093 = vmatpush3.bf16.msra.mxu0 %v2684_v10 }
 0x18c   :  { %1084 = vmatprep.subr.bf16.mxu1 %v2617_v52  ;;  %2094 = vmatprep.subr.bf16.mxu0 %v3247_v15 }
 0x18f   :  { %1085 = vmatpush1.bf16.msra.mxu1 %v2626_v55  ;;  %2095 = vmatpush3.bf16.msra.mxu0 %v2691_v11 }
 0x190   :  { %1086 = vmatprep.subr.bf16.mxu1 %v2630_v57  ;;  %2096 = vmatprep.subr.bf16.mxu0 %v3247_v15 }
 0x193   :  { %1087 = vmatpush1.bf16.msra.mxu1 %v2634_v59  ;;  %2097 = vmatpush3.bf16.msra.mxu0 %v2698_v12 }
 0x194   :  { %1088 = vmatprep.subr.bf16.mxu1 %v2643_v62  ;;  %2098 = vmatprep.subr.bf16.mxu0 %v3247_v15 }
 0x197   :  { %1089 = vmatpush1.bf16.msra.mxu1 %v2647_v1  ;;  %2099 = vmatpush3.bf16.msra.mxu0 %v2705_v13 }
 0x198   :  { %1090 = vmatprep.subr.bf16.mxu1 %v2649_v3  ;;  %2100 = vmatprep.subr.bf16.mxu0 %v3247_v15 }
 0x19b   :  { %1091 = vmatpush1.bf16.msra.mxu1 %v3249_v45  ;;  %2101 = vmatpush3.bf16.msra.mxu0 %v3250_v54 }
 0x19c   :  { %1189 = vmatprep.subr.bf16.mxu1 %v3251_v44  ;;  %2106 = vmatprep.subr.bf16.mxu0 %v3247_v15 }
 0x251   :  { %v997_v26 = vpop.f32.mrb[20].mxu1  ;;  %v1038_v22 = vpop.f32.mrb[36].mxu0 }
 0x252   :  { %v1044_v27 = vadd.f32 %v997_v26, %v2832_v14  ;;  %v999_v29 = vpop.f32.mrb[21].mxu1  ;;  %v2084_v63 = vpop.f32.mrb[37].mxu0  ;;  %v1058_v0 = vadd.f32 %v2882_v33, %v1038_v22 }
 0x253   :  { %v1051_v40 = vadd.f32 %v999_v29, %v2872_v2  ;;  %v1001_v56 = vpop.f32.mrb[22].mxu1  ;;  %v1041_v18 = vpop.f32.mrb[38].mxu0 }
 0x254   :  { %v1942_v47 = vmul.f32 -1.442695, %v1044_v27  ;;  %v1002_v23 = vpop.f32.mrb[23].mxu1  ;;  %v2085_v25 = vpop.f32.mrb[39].mxu0 }
 0x255   :  { %v1943_v36 = vmul.f32 -1.442695, %v1051_v40 }
 0x256   :  { %2361 = vpow2.f32 %v1942_v47 }
 0x257   :  { %2363 = vpow2.f32 %v1943_v36 }
 0x260   :  { %v2362_v38 = vpop.eup %2361 }
 0x261   :  { %v1048_v53 = vadd.f32 1.0, %v2362_v38  ;;  %v2364_v35 = vpop.eup %2363 }
 0x262   :  { %v1055_v34 = vadd.f32 1.0, %v2364_v35 }
 0x263   :  { %2365 = vrcp.f32 %v1048_v53 }
 0x264   :  { %2367 = vrcp.f32 %v1055_v34 }
 0x26d   :  { %v2366_v14 = vpop.eup %2365 }
 0x26e   :  { %v1059_v61 = vmul.f32 %v2366_v14, %v1058_v0  ;;  %v2368_v24 = vpop.eup %2367 }
 0x26f   :  { %v1062_v32 = vsub.f32 1.0, %v2368_v24  ;;  %v1064_v29 = vmul.f32 %v2368_v24, %v2885_v5  ;;  %v3252_v5 = vld [vmem:[#allocation15_spill] sm:$0xff] }
 0x270   :  { %v1060_v2 = vadd.f32 %v1059_v61, %v2877_v51 }
 0x272   :  { %2369 = vtanh.f32 %v1060_v2 }
 0x27c   :  { %v2370_v26 = vpop.eup %2369 }
 0x27d   :  { %v1063_v27 = vmul.f32 %v2370_v26, %v1062_v32 }
 0x27f   :  { %v2929_v63 = vadd.f32 %v1064_v29, %v1063_v27 }
 0x281   :  { %v1075_v40 = vpack.c.bf16 %v2929_v63, %v2929_v63 }
 0x283   :  { %1109 = vmatmul.mubr.bf16.vlgmr.msra.gmra.mrb[24].mxu1 %v1075_v40  ;;  %2103 = vmatmul.mubr.bf16.vlgmr.msra.gmra.mrb[40].mxu0 %v1075_v40 }
 0x284   :  { %1190 = vmatpush1.bf16.msra.mxu1 %v2585_v37  ;;  %2107 = vmatpush3.bf16.msra.mxu0 %v2662_v6 }
 0x285   :  { %1191 = vmatprep.subr.bf16.mxu1 %v2588_v39  ;;  %2108 = vmatprep.subr.bf16.mxu0 %v3247_v15 }
 0x286   :  { %1221 = vmatprep.mubr.bf16.mxu1 %v3248_v30  ;;  %2122 = vmatprep.mubr.msk.bf16.mxu0 %vm2511_vm0, %v3247_v15 }
 0x288   :  { %1192 = vmatpush1.bf16.msra.mxu1 %v2593_v41  ;;  %2109 = vmatpush3.bf16.msra.mxu0 %v2669_v8 }
 0x289   :  { %1193 = vmatprep.subr.bf16.mxu1 %v2596_v43  ;;  %2110 = vmatprep.subr.bf16.mxu0 %v3247_v15 }
 0x28c   :  { %1194 = vmatpush1.bf16.msra.mxu1 %v2605_v46  ;;  %2111 = vmatpush3.bf16.msra.mxu0 %v2677_v9 }
 0x28d   :  { %1195 = vmatprep.subr.bf16.mxu1 %v2609_v48  ;;  %2112 = vmatprep.subr.bf16.mxu0 %v3247_v15 }
 0x290   :  { %1196 = vmatpush1.bf16.msra.mxu1 %v2613_v50  ;;  %2113 = vmatpush3.bf16.msra.mxu0 %v2684_v10 }
 0x291   :  { %1197 = vmatprep.subr.bf16.mxu1 %v2617_v52  ;;  %2114 = vmatprep.subr.bf16.mxu0 %v3247_v15 }
 0x294   :  { %1198 = vmatpush1.bf16.msra.mxu1 %v2626_v55  ;;  %2115 = vmatpush3.bf16.msra.mxu0 %v2691_v11 }
 0x295   :  { %1199 = vmatprep.subr.bf16.mxu1 %v2630_v57  ;;  %2116 = vmatprep.subr.bf16.mxu0 %v3247_v15 }
 0x298   :  { %1200 = vmatpush1.bf16.msra.mxu1 %v2634_v59  ;;  %2117 = vmatpush3.bf16.msra.mxu0 %v2698_v12 }
 0x299   :  { %1201 = vmatprep.subr.bf16.mxu1 %v2643_v62  ;;  %2118 = vmatprep.subr.bf16.mxu0 %v3247_v15 }
 0x29c   :  { %1202 = vmatpush1.bf16.msra.mxu1 %v2647_v1  ;;  %2119 = vmatpush3.bf16.msra.mxu0 %v2705_v13 }
 0x29d   :  { %1203 = vmatprep.subr.bf16.mxu1 %v2649_v3  ;;  %2120 = vmatprep.subr.bf16.mxu0 %v3247_v15 }
 0x2a0   :  { %1204 = vmatpush1.bf16.msra.mxu1 %v3249_v45  ;;  %2121 = vmatpush3.bf16.msra.mxu0 %v3250_v54 }
 0x2a1   :  { %1302 = vmatprep.subr.bf16.mxu1 %v3251_v44  ;;  %2126 = vmatprep.subr.bf16.mxu0 %v3247_v15 }
 0x356   :  { %v1110_v37 = vpop.f32.mrb[24].mxu1  ;;  %v1151_v51 = vpop.f32.mrb[40].mxu0 }
 0x357   :  { %v1157_v22 = vadd.f32 %v1110_v37, %v3252_v5  ;;  %v1112_v56 = vpop.f32.mrb[25].mxu1  ;;  %v2104_v18 = vpop.f32.mrb[41].mxu0  ;;  %v1171_v61 = vadd.f32 %v2882_v33, %v1151_v51  ;;  %v2977_v51 = vld [vmem:[#allocation5] ss:$12 sps:$4 sm:$0xff]  }
 0x358   :  { %v1164_v47 = vadd.f32 %v1112_v56, %v2864_v58  ;;  %v1114_v23 = vpop.f32.mrb[26].mxu1  ;;  %v1154_v25 = vpop.f32.mrb[42].mxu0 }
 0x359   :  { %v1944_v36 = vmul.f32 -1.442695, %v1157_v22  ;;  %v1115_v38 = vpop.f32.mrb[27].mxu1  ;;  %v2105_v53 = vpop.f32.mrb[43].mxu0 }
 0x35a   :  { %v1945_v35 = vmul.f32 -1.442695, %v1164_v47 }
 0x35b   :  { %2371 = vpow2.f32 %v1944_v36 }
 0x35c   :  { %2373 = vpow2.f32 %v1945_v35 }
 0x365   :  { %v2372_v34 = vpop.eup %2371 }
 0x366   :  { %v1161_v44 = vadd.f32 1.0, %v2372_v34  ;;  %v2374_v0 = vpop.eup %2373 }
 0x367   :  { %v1168_v14 = vadd.f32 1.0, %v2374_v0 }
 0x368   :  { %2375 = vrcp.f32 %v1161_v44 }
 0x369   :  { %2377 = vrcp.f32 %v1168_v14 }
 0x372   :  { %v2376_v2 = vpop.eup %2375 }
 0x373   :  { %v1172_v24 = vmul.f32 %v2376_v2, %v1171_v61  ;;  %v2378_v32 = vpop.eup %2377  ;;  %v3027_v2 = vld [vmem:[#allocation5 + $0x1c] ss:$12 sps:$4 sm:$0xff]  }
 0x374   :  { %v1175_v26 = vsub.f32 1.0, %v2378_v32  ;;  %v1177_v40 = vmul.f32 %v2378_v32, %v2929_v63  ;;  %v3050_v32 = vld [vmem:[#allocation5 + $0x48] ss:$12 sps:$4 sm:$0xff]  }
 0x375   :  { %v1173_v58 = vadd.f32 %v1172_v24, %v2867_v28  ;;  %v3038_v24 = vld [vmem:[#allocation5 + $0x34] ss:$12 sps:$4 sm:$0xff]  }
 0x377   :  { %2379 = vtanh.f32 %v1173_v58  ;;  %v3046_v58 = vld [vmem:[#allocation5 + $0x4c] ss:$12 sps:$4 sm:$0xff]  }
 0x381   :  { %v2380_v27 = vpop.eup %2379 }
 0x382   :  { %v1176_v29 = vmul.f32 %v2380_v27, %v1175_v26  ;;  %v3058_v26 = vld [vmem:[#allocation5 + $0x60] ss:$12 sps:$4 sm:$0xff]   ;;  %v3062_v27 = vld [vmem:[#allocation5 + $0x7c] ss:$12 sps:$4 sm:$0xff]  }
 0x384   :  { %v2973_v37 = vadd.f32 %v1177_v40, %v1176_v29  ;;  %v3066_v29 = vld [vmem:[#allocation5 + $0x78] ss:$12 sps:$4 sm:$0xff]   ;;  %v3070_v40 = vld [vmem:[#allocation5 + $0x94] ss:$12 sps:$4 sm:$0xff]  }
 0x386   :  { %v1188_v5 = vpack.c.bf16 %v2973_v37, %v2973_v37 }
 0x388   :  { %1222 = vmatmul.mubr.bf16.vlgmr.msra.gmra.mrb[28].mxu1 %v1188_v5  ;;  %2123 = vmatmul.mubr.bf16.vlgmr.msra.gmra.mrb[44].mxu0 %v1188_v5 }
 0x389   :  { %1303 = vmatpush1.bf16.msra.mxu1 %v2977_v51  ;;  %2127 = vmatpush3.bf16.msra.mxu0 %v2662_v6 }
 0x38a   :  { %1304 = vmatprep.subr.bf16.mxu1 %v2588_v39  ;;  %2128 = vmatprep.subr.bf16.mxu0 %v3247_v15  ;;  %v3012_v39 = vld [vmem:[#allocation5 + $0x4] ss:$12 sps:$4 sm:$0xff]  }
 0x38b   :  { %1334 = vmatprep.mubr.bf16.mxu1 %v3248_v30  ;;  %2142 = vmatprep.mubr.msk.bf16.mxu0 %vm2511_vm0, %v3247_v15 }
 0x38d   :  { %1305 = vmatpush1.bf16.msra.mxu1 %v2593_v41  ;;  %2129 = vmatpush3.bf16.msra.mxu0 %v2669_v8 }
 0x38e   :  { %1306 = vmatprep.subr.bf16.mxu1 %v2596_v43  ;;  %2130 = vmatprep.subr.bf16.mxu0 %v3247_v15 }
 0x391   :  { %1307 = vmatpush1.bf16.msra.mxu1 %v2605_v46  ;;  %2131 = vmatpush3.bf16.msra.mxu0 %v2677_v9  ;;  %v3253_v46 = vld [vmem:[#allocation13_spill] sm:$0xff] }
 0x392   :  { %1308 = vmatprep.subr.bf16.mxu1 %v2609_v48  ;;  %2132 = vmatprep.subr.bf16.mxu0 %v3247_v15 }
 0x395   :  { %1309 = vmatpush1.bf16.msra.mxu1 %v2613_v50  ;;  %2133 = vmatpush3.bf16.msra.mxu0 %v2684_v10 }
 0x396   :  { %1310 = vmatprep.subr.bf16.mxu1 %v2617_v52  ;;  %2134 = vmatprep.subr.bf16.mxu0 %v3247_v15 }
 0x399   :  { %1311 = vmatpush1.bf16.msra.mxu1 %v2626_v55  ;;  %2135 = vmatpush3.bf16.msra.mxu0 %v2691_v11 }
 0x39a   :  { %1312 = vmatprep.subr.bf16.mxu1 %v2630_v57  ;;  %2136 = vmatprep.subr.bf16.mxu0 %v3247_v15 }
 0x39d   :  { %1313 = vmatpush1.bf16.msra.mxu1 %v2634_v59  ;;  %2137 = vmatpush3.bf16.msra.mxu0 %v2698_v12 }
 0x39e   :  { %1314 = vmatprep.subr.bf16.mxu1 %v2643_v62  ;;  %2138 = vmatprep.subr.bf16.mxu0 %v3247_v15 }
 0x3a1   :  { %1315 = vmatpush1.bf16.msra.mxu1 %v2647_v1  ;;  %2139 = vmatpush3.bf16.msra.mxu0 %v2705_v13 }
 0x3a2   :  { %1316 = vmatprep.subr.bf16.mxu1 %v2649_v3  ;;  %2140 = vmatprep.subr.bf16.mxu0 %v3247_v15 }
 0x3a5   :  { %1317 = vmatpush1.bf16.msra.mxu1 %v3249_v45  ;;  %2141 = vmatpush3.bf16.msra.mxu0 %v3250_v54 }
 0x3a6   :  { %1415 = vmatprep.subr.bf16.mxu1 %v3012_v39  ;;  %2146 = vmatprep.subr.bf16.mxu0 %v3247_v15 }
 0x45b   :  { %v1223_v41 = vpop.f32.mrb[28].mxu1  ;;  %v1264_v43 = vpop.f32.mrb[44].mxu0 }
 0x45c   :  { %v1270_v48 = vadd.f32 %v1223_v41, %v3253_v46  ;;  %v1225_v50 = vpop.f32.mrb[29].mxu1  ;;  %v2124_v52 = vpop.f32.mrb[45].mxu0  ;;  %v1284_v25 = vadd.f32 %v2882_v33, %v1264_v43  ;;  %v3254_v41 = vld [vmem:[#allocation12_spill] sm:$0xff] }
 0x45d   :  { %v1277_v55 = vadd.f32 %v1225_v50, %v2858_v4  ;;  %v1227_v57 = vpop.f32.mrb[30].mxu1  ;;  %v1267_v59 = vpop.f32.mrb[46].mxu0 }
 0x45e   :  { %v1946_v62 = vmul.f32 -1.442695, %v1270_v48  ;;  %v1228_v28 = vpop.f32.mrb[31].mxu1  ;;  %v2125_v63 = vpop.f32.mrb[47].mxu0 }
 0x45f   :  { %v1947_v22 = vmul.f32 -1.442695, %v1277_v55 }
 0x460   :  { %2381 = vpow2.f32 %v1946_v62 }
 0x461   :  { %2383 = vpow2.f32 %v1947_v22 }
 0x46a   :  { %v2382_v56 = vpop.eup %2381 }
 0x46b   :  { %v1274_v18 = vadd.f32 1.0, %v2382_v56  ;;  %v2384_v47 = vpop.eup %2383 }
 0x46c   :  { %v1281_v23 = vadd.f32 1.0, %v2384_v47 }
 0x46d   :  { %2385 = vrcp.f32 %v1274_v18 }
 0x46e   :  { %2387 = vrcp.f32 %v1281_v23 }
 0x477   :  { %v2386_v36 = vpop.eup %2385 }
 0x478   :  { %v1285_v38 = vmul.f32 %v2386_v36, %v1284_v25  ;;  %v2388_v53 = vpop.eup %2387 }
 0x479   :  { %v1288_v35 = vsub.f32 1.0, %v2388_v53  ;;  %v1290_v0 = vmul.f32 %v2388_v53, %v2973_v37 }
 0x47a   :  { %v1286_v4 = vadd.f32 %v1285_v38, %v2861_v20  ;;  %v3034_v20 = vld [vmem:[#allocation5 + $0x18] ss:$12 sps:$4 sm:$0xff]  }
 0x47c   :  { %2389 = vtanh.f32 %v1286_v4 }
 0x486   :  { %v2390_v34 = vpop.eup %2389 }
 0x487   :  { %v1289_v44 = vmul.f32 %v2390_v34, %v1288_v35  ;;  %v3092_v35 = vld [vmem:[#allocation5 + $0x8] ss:$12 sps:$4 sm:$0xff]  }
 0x489   :  { %v3021_v14 = vadd.f32 %v1290_v0, %v1289_v44  ;;  %v3255_v44 = vld [vmem:[#allocation14_spill] sm:$0xff] }
 0x48b   :  { %v1301_v61 = vpack.c.bf16 %v3021_v14, %v3021_v14 }
 0x48d   :  { %1335 = vmatmul.mubr.bf16.vlgmr.msra.gmra.mrb[32].mxu1 %v1301_v61  ;;  %2143 = vmatmul.mubr.bf16.vlgmr.msra.gmra.mrb[48].mxu0 %v1301_v61 }
 0x48e   :  { %1416 = vmatpush1.bf16.msra.mxu1 %v2977_v51  ;;  %2147 = vmatpush3.bf16.msra.mxu0 %v2662_v6  ;;  %v3042_v6 = vld [vmem:[#allocation5 + $0x30] ss:$12 sps:$4 sm:$0xff]  }
 0x48f   :  { %1417 = vmatprep.subr.bf16.mxu1 %v3027_v2  ;;  %2148 = vmatprep.subr.bf16.mxu0 %v3247_v15 }
 0x490   :  { %1447 = vmatprep.mubr.bf16.mxu1 %v3248_v30  ;;  %2162 = vmatprep.mubr.msk.bf16.mxu0 %vm2511_vm0, %v3247_v15 }
 0x492   :  { %1418 = vmatpush1.bf16.msra.mxu1 %v3034_v20  ;;  %2149 = vmatpush3.bf16.msra.mxu0 %v2669_v8  ;;  %v3054_v8 = vld [vmem:[#allocation5 + $0x64] ss:$12 sps:$4 sm:$0xff]  }
 0x493   :  { %1419 = vmatprep.subr.bf16.mxu1 %v3038_v24  ;;  %2150 = vmatprep.subr.bf16.mxu0 %v3247_v15 }
 0x496   :  { %1420 = vmatpush1.bf16.msra.mxu1 %v3042_v6  ;;  %2151 = vmatpush3.bf16.msra.mxu0 %v2677_v9 }
 0x497   :  { %1421 = vmatprep.subr.bf16.mxu1 %v3046_v58  ;;  %2152 = vmatprep.subr.bf16.mxu0 %v3247_v15 }
 0x49a   :  { %1422 = vmatpush1.bf16.msra.mxu1 %v3050_v32  ;;  %2153 = vmatpush3.bf16.msra.mxu0 %v2684_v10 }
 0x49b   :  { %1423 = vmatprep.subr.bf16.mxu1 %v3054_v8  ;;  %2154 = vmatprep.subr.bf16.mxu0 %v3247_v15 }
 0x49e   :  { %1424 = vmatpush1.bf16.msra.mxu1 %v3058_v26  ;;  %2155 = vmatpush3.bf16.msra.mxu0 %v2691_v11 }
 0x49f   :  { %1425 = vmatprep.subr.bf16.mxu1 %v3062_v27  ;;  %2156 = vmatprep.subr.bf16.mxu0 %v3247_v15 }
 0x4a2   :  { %1426 = vmatpush1.bf16.msra.mxu1 %v3066_v29  ;;  %2157 = vmatpush3.bf16.msra.mxu0 %v2698_v12 }
 0x4a3   :  { %1427 = vmatprep.subr.bf16.mxu1 %v3070_v40  ;;  %2158 = vmatprep.subr.bf16.mxu0 %v3247_v15 }
 0x4a6   :  { %1428 = vmatpush1.bf16.msra.mxu1 %v2647_v1  ;;  %2159 = vmatpush3.bf16.msra.mxu0 %v2705_v13 }
 0x4a7   :  { %1429 = vmatprep.subr.bf16.mxu1 %v2649_v3  ;;  %2160 = vmatprep.subr.bf16.mxu0 %v3247_v15 }
 0x4aa   :  { %1430 = vmatpush1.bf16.msra.mxu1 %v3249_v45  ;;  %2161 = vmatpush3.bf16.msra.mxu0 %v3250_v54 }
 0x4ab   :  { %1528 = vmatprep.subr.bf16.mxu1 %v3012_v39  ;;  %2166 = vmatprep.subr.bf16.mxu0 %v3247_v15 }
 0x560   :  { %v1336_v37 = vpop.f32.mrb[32].mxu1  ;;  %v1377_v5 = vpop.f32.mrb[48].mxu0 }
 0x561   :  { %v1383_v43 = vadd.f32 %v1336_v37, %v3254_v41  ;;  %v1338_v46 = vpop.f32.mrb[33].mxu1  ;;  %v2144_v1 = vpop.f32.mrb[49].mxu0  ;;  %v1397_v22 = vadd.f32 %v2882_v33, %v1377_v5 }
 0x562   :  { %v1390_v48 = vadd.f32 %v1338_v46, %v2852_v49  ;;  %v1340_v50 = vpop.f32.mrb[34].mxu1  ;;  %v1380_v3 = vpop.f32.mrb[50].mxu0 }
 0x563   :  { %v1948_v52 = vmul.f32 -1.442695, %v1383_v43  ;;  %v1341_v55 = vpop.f32.mrb[35].mxu1  ;;  %v2145_v57 = vpop.f32.mrb[51].mxu0 }
 0x564   :  { %v1949_v45 = vmul.f32 -1.442695, %v1390_v48 }
 0x565   :  { %2391 = vpow2.f32 %v1948_v52 }
 0x566   :  { %2393 = vpow2.f32 %v1949_v45 }
 0x56f   :  { %v2392_v59 = vpop.eup %2391 }
 0x570   :  { %v1387_v62 = vadd.f32 1.0, %v2392_v59  ;;  %v2394_v28 = vpop.eup %2393 }
 0x571   :  { %v1394_v63 = vadd.f32 1.0, %v2394_v28 }
 0x572   :  { %2395 = vrcp.f32 %v1387_v62 }
 0x573   :  { %2397 = vrcp.f32 %v1394_v63 }
 0x57c   :  { %v2396_v56 = vpop.eup %2395 }
 0x57d   :  { %v1398_v18 = vmul.f32 %v2396_v56, %v1397_v22  ;;  %v2398_v47 = vpop.eup %2397 }
 0x57e   :  { %v1401_v23 = vsub.f32 1.0, %v2398_v47  ;;  %v1403_v38 = vmul.f32 %v2398_v47, %v3021_v14 }
 0x57f   :  { %v1399_v49 = vadd.f32 %v1398_v18, %v2855_v21  ;;  %v3101_v21 = vld [vmem:[#allocation5 + $0x20] ss:$12 sps:$4 sm:$0xff]  }
 0x581   :  { %2399 = vtanh.f32 %v1399_v49 }
 0x58b   :  { %v2400_v25 = vpop.eup %2399 }
 0x58c   :  { %v1402_v36 = vmul.f32 %v2400_v25, %v1401_v23 }
 0x58e   :  { %v3087_v4 = vadd.f32 %v1403_v38, %v1402_v36 }
 0x590   :  { %v1414_v53 = vpack.c.bf16 %v3087_v4, %v3087_v4 }
 0x592   :  { %1448 = vmatmul.mubr.bf16.vlgmr.msra.gmra.mrb[36].mxu1 %v1414_v53  ;;  %2163 = vmatmul.mubr.bf16.vlgmr.msra.gmra.mrb[52].mxu0 %v1414_v53 }
 0x593   :  { %1529 = vmatpush1.bf16.msra.mxu1 %v2977_v51  ;;  %2167 = vmatpush3.bf16.msra.mxu0 %v3092_v35 }
 0x594   :  { %1530 = vmatprep.subr.bf16.mxu1 %v3027_v2  ;;  %2168 = vmatprep.subr.bf16.mxu0 %v3247_v15 }
 0x595   :  { %1560 = vmatprep.mubr.bf16.mxu1 %v3248_v30  ;;  %2182 = vmatprep.mubr.msk.bf16.mxu0 %vm2511_vm0, %v3247_v15 }
 0x597   :  { %1531 = vmatpush1.bf16.msra.mxu1 %v3034_v20  ;;  %2169 = vmatpush3.bf16.msra.mxu0 %v3101_v21 }
 0x598   :  { %1532 = vmatprep.subr.bf16.mxu1 %v3038_v24  ;;  %2170 = vmatprep.subr.bf16.mxu0 %v3247_v15 }
 0x59b   :  { %1533 = vmatpush1.bf16.msra.mxu1 %v3042_v6  ;;  %2171 = vmatpush3.bf16.msra.mxu0 %v2677_v9  ;;  %v3122_v9 = vld [vmem:[#allocation5 + $0x90] ss:$12 sps:$4 sm:$0xff]  }
 0x59c   :  { %1534 = vmatprep.subr.bf16.mxu1 %v3046_v58  ;;  %2172 = vmatprep.subr.bf16.mxu0 %v3247_v15 }
 0x59f   :  { %1535 = vmatpush1.bf16.msra.mxu1 %v3050_v32  ;;  %2173 = vmatpush3.bf16.msra.mxu0 %v2684_v10  ;;  %v3126_v10 = vld [vmem:[#allocation5 + $0xac] ss:$12 sps:$4 sm:$0xff]  }
 0x5a0   :  { %1536 = vmatprep.subr.bf16.mxu1 %v3054_v8  ;;  %2174 = vmatprep.subr.bf16.mxu0 %v3247_v15 }
 0x5a3   :  { %1537 = vmatpush1.bf16.msra.mxu1 %v3058_v26  ;;  %2175 = vmatpush3.bf16.msra.mxu0 %v2691_v11  ;;  %v3130_v11 = vld [vmem:[#allocation5 + $0xa8] ss:$12 sps:$4 sm:$0xff]  }
 0x5a4   :  { %1538 = vmatprep.subr.bf16.mxu1 %v3062_v27  ;;  %2176 = vmatprep.subr.bf16.mxu0 %v3247_v15 }
 0x5a7   :  { %1539 = vmatpush1.bf16.msra.mxu1 %v3066_v29  ;;  %2177 = vmatpush3.bf16.msra.mxu0 %v2698_v12 }
 0x5a8   :  { %1540 = vmatprep.subr.bf16.mxu1 %v3070_v40  ;;  %2178 = vmatprep.subr.bf16.mxu0 %v3247_v15 }
 0x5ab   :  { %1541 = vmatpush1.bf16.msra.mxu1 %v3122_v9  ;;  %2179 = vmatpush3.bf16.msra.mxu0 %v2705_v13 }
 0x5ac   :  { %1542 = vmatprep.subr.bf16.mxu1 %v3126_v10  ;;  %2180 = vmatprep.subr.bf16.mxu0 %v3247_v15 }
 0x5af   :  { %1543 = vmatpush1.bf16.msra.mxu1 %v3130_v11  ;;  %2181 = vmatpush3.bf16.msra.mxu0 %v3250_v54 }
 0x5b0   :  { %1641 = vmatprep.subr.bf16.mxu1 %v3012_v39  ;;  %2186 = vmatprep.subr.bf16.mxu0 %v3247_v15 }
 0x665   :  { %v1449_v12 = vpop.f32.mrb[36].mxu1  ;;  %v1490_v34 = vpop.f32.mrb[52].mxu0 }
 0x666   :  { %v1496_v13 = vadd.f32 %v1449_v12, %v3255_v44  ;;  %v1451_v0 = vpop.f32.mrb[37].mxu1  ;;  %v2164_v14 = vpop.f32.mrb[53].mxu0  ;;  %v1510_v3 = vadd.f32 %v2882_v33, %v1490_v34 }
 0x667   :  { %v1503_v61 = vadd.f32 %v1451_v0, %v2847_v42  ;;  %v1453_v37 = vpop.f32.mrb[38].mxu1  ;;  %v1493_v5 = vpop.f32.mrb[54].mxu0  ;;  %v2343_v0 = vld [vmem:[%s3226_s5] sm:$0xff]   ;;  %v2345_v14 = vld [vmem:[%s3226_s5 + $0x10] sm:$0xff]  }
 0x668   :  { %v1950_v41 = vmul.f32 -1.442695, %v1496_v13  ;;  %v1454_v43 = vpop.f32.mrb[39].mxu1  ;;  %v2165_v46 = vpop.f32.mrb[55].mxu0  ;;  %v2347_v37 = vld [vmem:[%s3226_s5 + $0x20] sm:$0xff]   ;;  %v2348_v5 = vld [vmem:[%s3226_s5 + $0x28] sm:$0xff]  }
 0x669   :  { %v1951_v1 = vmul.f32 -1.442695, %v1503_v61  ;;  %v2346_v61 = vld [vmem:[%s3226_s5 + $0x18] sm:$0xff]  }
 0x66a   :  { %2401 = vpow2.f32 %v1950_v41  ;;  %v2349_v41 = vld [vmem:[%s3226_s5 + $0x30] sm:$0xff]   ;;  %v2350_v43 = vld [vmem:[%s3226_s5 + $0x38] sm:$0xff]  }
 0x66b   :  { %2403 = vpow2.f32 %v1951_v1 }
 0x674   :  { %v2402_v54 = vpop.eup %2401 }
 0x675   :  { %v1500_v39 = vadd.f32 1.0, %v2402_v54  ;;  %v2404_v48 = vpop.eup %2403 }
 0x676   :  { %v1507_v50 = vadd.f32 1.0, %v2404_v48 }
 0x677   :  { %2405 = vrcp.f32 %v1500_v39 }
 0x678   :  { %2407 = vrcp.f32 %v1507_v50 }
 0x681   :  { %v2406_v52 = vpop.eup %2405 }
 0x682   :  { %v1511_v55 = vmul.f32 %v2406_v52, %v1510_v3  ;;  %v2408_v57 = vpop.eup %2407 }
 0x683   :  { %v1514_v45 = vsub.f32 1.0, %v2408_v57  ;;  %v1516_v28 = vmul.f32 %v2408_v57, %v3087_v4 }
 0x684   :  { %v1512_v42 = vadd.f32 %v1511_v55, %v2849_v60  ;;  %v2449_v60 = vld [vmem:[#allocation5 + $0x38] ss:$12 sps:$4 sm:$0xff]  }
 0x686   :  { %2409 = vtanh.f32 %v1512_v42 }
 0x690   :  { %v2410_v59 = vpop.eup %2409 }
 0x691   :  { %v1515_v62 = vmul.f32 %v2410_v59, %v1514_v45 }
 0x693   :  { %v3141_v63 = vadd.f32 %v1516_v28, %v1515_v62 }
 0x695   :  { %v1527_v22 = vpack.c.bf16 %v3141_v63, %v3141_v63 }
 0x697   :  { %1561 = vmatmul.mubr.bf16.vlgmr.msra.gmra.mrb[40].mxu1 %v1527_v22  ;;  %2183 = vmatmul.mubr.bf16.vlgmr.msra.gmra.mrb[56].mxu0 %v1527_v22 }
 0x698   :  { %1642 = vmatpush1.bf16.msra.mxu1 %v2977_v51  ;;  %2187 = vmatpush3.bf16.msra.mxu0 %v3092_v35  ;;  %v2451_v51 = vld [vmem:[#allocation5 + $0x68] ss:$12 sps:$4 sm:$0xff]  }
 0x699   :  { %1643 = vmatprep.subr.bf16.mxu1 %v3027_v2  ;;  %2188 = vmatprep.subr.bf16.mxu0 %v3247_v15  ;;  %v2452_v2 = vld [vmem:[#allocation5 + $0x80] ss:$12 sps:$4 sm:$0xff]  }
 0x69a   :  { %1673 = vmatprep.mubr.bf16.mxu1 %v3248_v30  ;;  %2202 = vmatprep.mubr.msk.bf16.mxu0 %vm2511_vm0, %v3247_v15  ;;  %v2450_v30 = vld [vmem:[#allocation5 + $0x50] ss:$12 sps:$4 sm:$0xff]  }
 0x69c   :  { %1644 = vmatpush1.bf16.msra.mxu1 %v3034_v20  ;;  %2189 = vmatpush3.bf16.msra.mxu0 %v3101_v21  ;;  %v2453_v20 = vld [vmem:[#allocation5 + $0x98] ss:$12 sps:$4 sm:$0xff]  }
 0x69d   :  { %1645 = vmatprep.subr.bf16.mxu1 %v3038_v24  ;;  %2190 = vmatprep.subr.bf16.mxu0 %v3247_v15  ;;  %v2454_v24 = vld [vmem:[#allocation5 + $0xb0] ss:$12 sps:$4 sm:$0xff]  }
 0x6a0   :  { %1646 = vmatpush1.bf16.msra.mxu1 %v3042_v6  ;;  %2191 = vmatpush3.bf16.msra.mxu0 %v2449_v60 }
 0x6a1   :  { %1647 = vmatprep.subr.bf16.mxu1 %v3046_v58  ;;  %2192 = vmatprep.subr.bf16.mxu0 %v3247_v15 }
 0x6a4   :  { %1648 = vmatpush1.bf16.msra.mxu1 %v3050_v32  ;;  %2193 = vmatpush3.bf16.msra.mxu0 %v2450_v30  ;;  %v3256_v32 = vld [vmem:[#allocation16_spill] sm:$0xff] }
 0x6a5   :  { %1649 = vmatprep.subr.bf16.mxu1 %v3054_v8  ;;  %2194 = vmatprep.subr.bf16.mxu0 %v3247_v15 }
 0x6a8   :  { %1650 = vmatpush1.bf16.msra.mxu1 %v3058_v26  ;;  %2195 = vmatpush3.bf16.msra.mxu0 %v2451_v51 }
 0x6a9   :  { %1651 = vmatprep.subr.bf16.mxu1 %v3062_v27  ;;  %2196 = vmatprep.subr.bf16.mxu0 %v3247_v15 }
 0x6ac   :  { %1652 = vmatpush1.bf16.msra.mxu1 %v3066_v29  ;;  %2197 = vmatpush3.bf16.msra.mxu0 %v2452_v2 }
 0x6ad   :  { %1653 = vmatprep.subr.bf16.mxu1 %v3070_v40  ;;  %2198 = vmatprep.subr.bf16.mxu0 %v3247_v15 }
 0x6b0   :  { %1654 = vmatpush1.bf16.msra.mxu1 %v3122_v9  ;;  %2199 = vmatpush3.bf16.msra.mxu0 %v2453_v20 }
 0x6b1   :  { %1655 = vmatprep.subr.bf16.mxu1 %v3126_v10  ;;  %2200 = vmatprep.subr.bf16.mxu0 %v3247_v15 }
 0x6b4   :  { %1656 = vmatpush1.bf16.msra.mxu1 %v3130_v11  ;;  %2201 = vmatpush3.bf16.msra.mxu0 %v2454_v24 }
 0x6b5   :  { %2206 = vmatprep.subr.bf16.mxu1 %v3247_v15 }
 0x76a   :  { %v1562_v6 = vpop.f32.mrb[40].mxu1  ;;  %v1603_v58 = vpop.f32.mrb[56].mxu0 }
 0x76b   :  { %v1609_v8 = vadd.f32 %v1562_v6, %v3256_v32  ;;  %v1564_v26 = vpop.f32.mrb[41].mxu1  ;;  %v2184_v27 = vpop.f32.mrb[57].mxu0  ;;  %v1623_v53 = vadd.f32 %v2882_v33, %v1603_v58  ;;  %v1956_v58 = vld [vmem:[%s3227_s6] ss:$0 sm:$0xff] }
 0x76c   :  { %v1616_v29 = vadd.f32 %v1564_v26, %v2843_v7  ;;  %v1566_v40 = vpop.f32.mrb[42].mxu1  ;;  %v1606_v56 = vpop.f32.mrb[58].mxu0 }
 0x76d   :  { %v1952_v18 = vmul.f32 -1.442695, %v1609_v8  ;;  %v1567_v49 = vpop.f32.mrb[43].mxu1  ;;  %v2185_v47 = vpop.f32.mrb[59].mxu0 }
 0x76e   :  { %v1953_v23 = vmul.f32 -1.442695, %v1616_v29 }
 0x76f   :  { %2411 = vpow2.f32 %v1952_v18 }
 0x770   :  { %2413 = vpow2.f32 %v1953_v23 }
 0x779   :  { %v2412_v25 = vpop.eup %2411 }
 0x77a   :  { %v1613_v36 = vadd.f32 1.0, %v2412_v25  ;;  %v2414_v38 = vpop.eup %2413 }
 0x77b   :  { %v1620_v4 = vadd.f32 1.0, %v2414_v38 }
 0x77c   :  { %2415 = vrcp.f32 %v1613_v36 }
 0x77d   :  { %2417 = vrcp.f32 %v1620_v4 }
 0x786   :  { %v2416_v35 = vpop.eup %2415 }
 0x787   :  { %v1624_v21 = vmul.f32 %v2416_v35, %v1623_v53  ;;  %v2418_v9 = vpop.eup %2417 }
 0x788   :  { %v1627_v10 = vsub.f32 1.0, %v2418_v9  ;;  %v1629_v34 = vmul.f32 %v2418_v9, %v3141_v63 }
 0x789   :  { %v1625_v7 = vadd.f32 %v1624_v21, %v2845_v19  ;;  %v2344_v19 = vld [vmem:[%s3226_s5 + $0x8] sm:$0xff]  }
 0x78b   :  { %2419 = vtanh.f32 %v1625_v7 }
 0x795   :  { %v2420_v11 = vpop.eup %2419 }
 0x796   :  { %v1628_v12 = vmul.f32 %v2420_v11, %v1627_v10 }
 0x798   :  { %v1630_v44 = vadd.f32 %v1629_v34, %v1628_v12 }
 0x79a   :  { %v1640_v13 = vpack.c.bf16 %v1630_v44, %v1630_v44 }
 0x79c   :  { %1674 = vmatmul.mubr.bf16.vlgmr.msra.gmra.mrb[44].mxu1 %v1640_v13  ;;  %2203 = vmatmul.mubr.bf16.vlgmr.msra.gmra.mrb[60].mxu0 %v1640_v13 }
 0x79d   :  { %2222 = vmatprep.mubr.msk.bf16.mxu1 %vm2511_vm0, %v3247_v15  ;;  %2207 = vmatpush3.bf16.msra.mxu1 %v2343_v0 }
 0x79e   :  { %2208 = vmatprep.subr.bf16.mxu1 %v3247_v15 }
 0x7a1   :  { %2209 = vmatpush3.bf16.msra.mxu1 %v2344_v19 }
 0x7a2   :  { %2210 = vmatprep.subr.bf16.mxu1 %v3247_v15 }
 0x7a5   :  { %2211 = vmatpush3.bf16.msra.mxu1 %v2345_v14 }
 0x7a6   :  { %2212 = vmatprep.subr.bf16.mxu1 %v3247_v15 }
 0x7a9   :  { %2213 = vmatpush3.bf16.msra.mxu1 %v2346_v61 }
 0x7aa   :  { %2214 = vmatprep.subr.bf16.mxu1 %v3247_v15 }
 0x7ad   :  { %2215 = vmatpush3.bf16.msra.mxu1 %v2347_v37 }
 0x7ae   :  { %2216 = vmatprep.subr.bf16.mxu1 %v3247_v15 }
 0x7b1   :  { %2217 = vmatpush3.bf16.msra.mxu1 %v2348_v5 }
 0x7b2   :  { %2218 = vmatprep.subr.bf16.mxu1 %v3247_v15 }
 0x7b5   :  { %2219 = vmatpush3.bf16.msra.mxu1 %v2349_v41 }
 0x7b6   :  { %2220 = vmatprep.subr.bf16.mxu1 %v3247_v15 }
 0x7b9   :  { %2221 = vmatpush3.bf16.msra.mxu1 %v2350_v43 }
 0x86f   :  { %v1675_v46 = vpop.f32.mrb[44].mxu1  ;;  %v1716_v1 = vpop.f32.mrb[60].mxu0 }
 0x870   :  { %v1722_v54 = vadd.f32 %v1675_v46, %v2836_v16  ;;  %v1677_v39 = vpop.f32.mrb[45].mxu1  ;;  %v2204_v48 = vpop.f32.mrb[61].mxu0  ;;  %v1736_v63 = vadd.f32 %v2882_v33, %v1716_v1 }
 0x871   :  { %v1729_v50 = vadd.f32 %v1677_v39, %v2839_v17  ;;  %v1679_v3 = vpop.f32.mrb[46].mxu1  ;;  %v1719_v52 = vpop.f32.mrb[62].mxu0 }
 0x872   :  { %v1954_v55 = vmul.f32 -1.442695, %v1722_v54  ;;  %v1680_v42 = vpop.f32.mrb[47].mxu1  ;;  %v2205_v57 = vpop.f32.mrb[63].mxu0 }
 0x873   :  { %v1955_v45 = vmul.f32 -1.442695, %v1729_v50 }
 0x874   :  { %2421 = vpow2.f32 %v1954_v55 }
 0x875   :  { %2423 = vpow2.f32 %v1955_v45 }
 0x87e   :  { %v2422_v59 = vpop.eup %2421 }
 0x87f   :  { %v1726_v62 = vadd.f32 1.0, %v2422_v59  ;;  %v2424_v15 = vpop.eup %2423 }
 0x880   :  { %v1733_v28 = vadd.f32 1.0, %v2424_v15 }
 0x881   :  { %2425 = vrcp.f32 %v1726_v62 }
 0x882   :  { %2427 = vrcp.f32 %v1733_v28 }
 0x88b   :  { %v2426_v16 = vpop.eup %2425 }
 0x88c   :  { %v1737_v22 = vmul.f32 %v2426_v16, %v1736_v63  ;;  %v2428_v60 = vpop.eup %2427 }
 0x88d   :  { %v1740_v30 = vsub.f32 1.0, %v2428_v60  ;;  %v1742_v20 = vmul.f32 %v2428_v60, %v1630_v44 }
 0x88e   :  { %v1738_v17 = vadd.f32 %v1737_v22, %v2841_v31 }
 0x890   :  { %2429 = vtanh.f32 %v1738_v17 }
 0x89a   :  { %v2430_v51 = vpop.eup %2429 }
 0x89b   :  { %v1741_v2 = vmul.f32 %v2430_v51, %v1740_v30 }
 0x89d   :  { %v1743_v24 = vadd.f32 %v1742_v20, %v1741_v2 }
 0x89f   :  { %v1744_v6 = vpack.c.bf16 %v1743_v24, %v1743_v24 }
 0x8a1   :  { %2223 = vmatmul.mubr.bf16.vlgmr.msra.gmra.mrb[48].mxu1 %v1744_v6 }
 0x974   :  { %v1850_v32 = vpop.f32.mrb[48].mxu1 }
 0x975   :  { %v1851_v33 = vadd.f32 %v1956_v58, %v1850_v32  ;;  %v2224_v8 = vpop.f32.mrb[49].mxu1 }
 0x976   :  { %v1853_v26 = vpop.f32.mrb[50].mxu1 }
 0x977   :  { %1856 = vst [vmem:[%s3228_s7] sm:$0xff] %v1851_v33  ;;  %v2225_v31 = vpop.f32.mrb[51].mxu1 }
 0x978   :  { %1861 = vsyncpa [#allocation4], 1 }
 0x979   :  { %1862 = vsyncpa [#allocation6], 1 }

</bundles_post_ra>
